<compile_context>
chip_gen: v7x
topology: tpu7x:2x2x1
jax: 0.10.0
libtpu: 0.0.40
codegen_flags: <defaults>
</compile_context>

<pallas_src>
import jax
import jax.numpy as jnp
from jax import lax
from jax.experimental import pallas as pl
from jax.experimental.pallas import tpu as pltpu


def _round_up(x, m):
    return (x + m - 1) // m * m


def lstm_encode_kernel(x_ref, wih_ref, whh_ref, b_ref, cap_ref, out_ref, xproj_scr):
    """Full maxout-LSTM recurrence in a single kernel invocation.

    x_ref     : ((T-1)*Bp, Ep)   bf16   time-major embedded inputs (rows [t*Bp,(t+1)*Bp) = step t)
    wih_ref   : (Ep, 5*Hp)       bf16   i2h weights, gate-padded columns [in|forget|out|max1|max2]
    whh_ref   : (Hp, 5*Hp)       bf16   h2h weights, gate-padded columns
    b_ref     : (1, 5*Hp)        f32    combined bias (gate-padded)
    cap_ref   : (Bp, 1)          int32  per-row capture timestep (-1 for padded rows)
    out_ref   : (Bp, Hp)         f32    captured hidden states
    xproj_scr : ((T-1)*Bp, 5*Hp) f32    scratch: precomputed input projections (+ bias)
    """
    Bp, Hp = out_ref.shape
    Tm1 = x_ref.shape[0] // Bp

    # One big MXU pass: project every timestep's input at once, fold the bias in once.
    xproj_scr[...] = (
        jnp.dot(x_ref[...], wih_ref[...], preferred_element_type=jnp.float32)
        + b_ref[...]
    )

    whh = whh_ref[...]      # (Hp, 5*Hp) bf16, loop-invariant
    cap = cap_ref[...]      # (Bp, 1) int32, loop-invariant

    def step(t, carry):
        h, c, out = carry
        xproj_t = xproj_scr[pl.ds(t * Bp, Bp), :]                        # (Bp, 5*Hp) f32
        sums = xproj_t + jnp.dot(h.astype(jnp.bfloat16), whh,
                                 preferred_element_type=jnp.float32)     # (Bp, 5*Hp) f32
        # Gate columns are [in | forget | out | max1 | max2], each a full Hp (128-lane
        # aligned) slab, so every slice below is vreg-aligned.  Single sigmoid over the
        # contiguous (Bp, 3*Hp) slab feeds the EUP with whole vregs.
        sig = jax.nn.sigmoid(sums[:, 0:3 * Hp])
        in_gate = sig[:, 0:Hp]
        forget_gate = sig[:, Hp:2 * Hp]
        out_gate = sig[:, 2 * Hp:3 * Hp]
        in_transform = jnp.maximum(sums[:, 3 * Hp:4 * Hp], sums[:, 4 * Hp:5 * Hp])

        c = forget_gate * c + in_gate * in_transform
        h = out_gate * jnp.tanh(c)
        # Capture h for rows whose stop position is this timestep.
        out = jnp.where(cap == t, h, out)
        return h, c, out

    zeros = jnp.zeros((Bp, Hp), jnp.float32)
    _, _, out = lax.fori_loop(0, Tm1, step, (zeros, zeros, zeros), unroll=True)
    out_ref[...] = out
    # NOTE: dropout on the LSTMCore *output* never affects the returned state -> omitted.


def sen_encode_forward(seq, seq_masks, embed_w, w_ih, w_hh, bias):
    """Forward pass of SenEncodeModel.

    seq       : (B, T) or (B0, S, T) int32 token ids
    seq_masks : same leading shape, float mask
    embed_w   : (vocab+1, E) f32
    w_ih      : (E, 5H) f32  (input-major i2h weight)
    w_hh      : (H, 5H) f32
    bias      : (1, 5H) f32  (b_i2h + b_h2h)
    returns   : (B, H) f32 hidden state captured at each row's stop position
    """
    if seq.ndim == 3:
        seq = seq.reshape(-1, seq.shape[2])
        seq_masks = seq_masks.reshape(-1, seq_masks.shape[2])
    B, T = seq.shape
    E = w_ih.shape[0]
    H = w_hh.shape[0]
    Tm1 = T - 1

    Bp = _round_up(B, 8)       # sublane-aligned batch
    Ep = _round_up(E, 128)     # lane-aligned embedding width
    Hp = _round_up(H, 128)     # lane-aligned per-gate width

    # stop_sign[b] = (sum of mask) - 1 ; PyTorch captures h after step i == stop_sign for
    # stop_sign in [1, T-2] and after the last step when stop_sign == T-1.
    # (Rows with stop_sign == 0 are captured at t=0 here; the PyTorch code assumes every
    #  row has >= 2 valid tokens, so this path never triggers in practice.)
    stop_sign = (jnp.sum(seq_masks, axis=1) - 1.0).astype(jnp.int32)
    cap_t = jnp.minimum(stop_sign, T - 2).reshape(B, 1)
    cap_t = jnp.pad(cap_t, ((0, Bp - B), (0, 0)), constant_values=-1)

    # Embedding gather directly in time-major order (no separate activation transpose).
    x = embed_w[seq[:, :T - 1].T]                                  # (T-1, B, E) f32
    x = jnp.pad(x, ((0, 0), (0, Bp - B), (0, Ep - E)))
    x = x.reshape(Tm1 * Bp, Ep).astype(jnp.bfloat16)

    # Gate-padded weights: view columns as (5, H) so each gate gets its own lane-aligned
    # Hp-wide slab; zero padding keeps padded hidden units exactly 0 through the recurrence.
    w_ih_p = jnp.pad(w_ih.reshape(E, 5, H),
                     ((0, Ep - E), (0, 0), (0, Hp - H))).reshape(Ep, 5 * Hp)
    w_hh_p = jnp.pad(w_hh.reshape(H, 5, H),
                     ((0, Hp - H), (0, 0), (0, Hp - H))).reshape(Hp, 5 * Hp)
    bias_p = jnp.pad(bias.reshape(1, 5, H),
                     ((0, 0), (0, 0), (0, Hp - H))).reshape(1, 5 * Hp)

    out_p = pl.pallas_call(
        lstm_encode_kernel,
        out_shape=jax.ShapeDtypeStruct((Bp, Hp), jnp.float32),
        grid_spec=pltpu.PrefetchScalarGridSpec(
            num_scalar_prefetch=0,
            grid=(1,),
            in_specs=[
                pl.BlockSpec((Tm1 * Bp, Ep), lambda i: (0, 0)),     # x (time-major, flat)
                pl.BlockSpec((Ep, 5 * Hp), lambda i: (0, 0)),       # w_ih (bf16)
                pl.BlockSpec((Hp, 5 * Hp), lambda i: (0, 0)),       # w_hh (bf16)
                pl.BlockSpec((1, 5 * Hp), lambda i: (0, 0)),        # bias (f32)
                pl.BlockSpec((Bp, 1), lambda i: (0, 0)),            # capture step per row
            ],
            out_specs=pl.BlockSpec((Bp, Hp), lambda i: (0, 0)),
            scratch_shapes=[pltpu.VMEM((Tm1 * Bp, 5 * Hp), jnp.float32)],
        ),
        compiler_params=pltpu.CompilerParams(
            dimension_semantics=("arbitrary",),
            vmem_limit_bytes=32 * 1024 * 1024,
        ),
    )(x,
      w_ih_p.astype(jnp.bfloat16),
      w_hh_p.astype(jnp.bfloat16),
      bias_p.astype(jnp.float32),
      cap_t.astype(jnp.int32))

    return out_p[:B, :H]


def ref_forward(seq, seq_masks, embed_w, w_ih, w_hh, bias):
    """Pure-JAX reference mirroring the PyTorch forward loop.

    Operands are rounded through bf16 (exactly as the kernel feeds the MXU) so the
    comparison is tight; accumulation and gate math stay f32.
    """
    B, T = seq.shape
    H = w_hh.shape[0]
    bf = lambda a: a.astype(jnp.bfloat16).astype(jnp.float32)
    emb = bf(embed_w)
    wih = bf(w_ih)
    whh = bf(w_hh)
    h = jnp.zeros((B, H), jnp.float32)
    c = jnp.zeros((B, H), jnp.float32)
    out = jnp.zeros((B, H), jnp.float32)
    stop_sign = (jnp.sum(seq_masks, axis=1) - 1.0).astype(jnp.int32)
    cap_t = jnp.minimum(stop_sign, T - 2)
    for i in range(T - 1):
        xt = emb[seq[:, i]]
        sums = xt @ wih + bf(h) @ whh + bias
        ig = jax.nn.sigmoid(sums[:, 0:H])
        fg = jax.nn.sigmoid(sums[:, H:2 * H])
        og = jax.nn.sigmoid(sums[:, 2 * H:3 * H])
        itf = jnp.maximum(sums[:, 3 * H:4 * H], sums[:, 4 * H:5 * H])
        c = fg * c + ig * itf
        h = og * jnp.tanh(c)
        out = jnp.where((cap_t == i)[:, None], h, out)
    return out


if __name__ == "__main__":
    # Small, deterministic configuration.
    vocab_size = 20
    E = 32           # input_encoding_size
    H = 32           # rnn_size
    B = 4            # batch * seq_per_img
    T = 8            # seq length

    key = jax.random.PRNGKey(0)
    k_emb, k_wih, k_whh, k_bih, k_bhh, k_seq = jax.random.split(key, 6)

    initrange = 0.1
    embed_w = jax.random.uniform(k_emb, (vocab_size + 1, E), jnp.float32,
                                 -initrange, initrange)
    w_ih = jax.random.uniform(k_wih, (E, 5 * H), jnp.float32, -0.1, 0.1)
    w_hh = jax.random.uniform(k_whh, (H, 5 * H), jnp.float32, -0.1, 0.1)
    b_ih = jax.random.uniform(k_bih, (5 * H,), jnp.float32, -0.1, 0.1)
    b_hh = jax.random.uniform(k_bhh, (5 * H,), jnp.float32, -0.1, 0.1)
    bias = (b_ih + b_hh).reshape(1, 5 * H)

    seq = jax.random.randint(k_seq, (B, T), 1, vocab_size + 1, jnp.int32)
    # Each row has at least 2 valid tokens (stop_sign >= 1), as the PyTorch code assumes.
    lengths = jnp.array([3, 8, 5, 2], jnp.int32)
    seq_masks = (jnp.arange(T)[None, :] < lengths[:, None]).astype(jnp.float32)

    out = sen_encode_forward(seq, seq_masks, embed_w, w_ih, w_hh, bias)
    out = jax.block_until_ready(out)

    ref = ref_forward(seq, seq_masks, embed_w, w_ih, w_hh, bias)
    assert out.shape == (B, H)
    assert jnp.allclose(out, ref, atol=1e-3, rtol=1e-3), (
        "mismatch vs reference, max abs err = %r" % float(jnp.max(jnp.abs(out - ref))))

    print("KERNEL_OK")
</pallas_src>

<mosaic_0001>
module attributes {stable_mosaic.version = 11 : i64} {
  func.func @lstm_encode_kernel(%arg0: i32, %arg1: memref<56x128xbf16, #tpu.memory_space<vmem>>, %arg2: memref<128x640xbf16, #tpu.memory_space<vmem>>, %arg3: memref<128x640xbf16, #tpu.memory_space<vmem>>, %arg4: memref<1x640xf32, #tpu.memory_space<vmem>>, %arg5: memref<8x1xi32, #tpu.memory_space<vmem>>, %arg6: memref<8x128xf32, #tpu.memory_space<vmem>>, %arg7: memref<56x640xf32, #tpu.memory_space<vmem>>) attributes {dimension_semantics = [#tpu.dimension_semantics<arbitrary>], iteration_bounds = array<i64: 1>, scalar_prefetch = 0 : i64, scratch_operands = 1 : i64, tpu.core_type = #tpu.core_type<tc>, window_params = [{pipeline_mode = #tpu.pipeline_mode<synchronous>, transform_indices = @transform_0, window_bounds = array<i64: 56, 128>}, {pipeline_mode = #tpu.pipeline_mode<synchronous>, transform_indices = @transform_1, window_bounds = array<i64: 128, 640>}, {pipeline_mode = #tpu.pipeline_mode<synchronous>, transform_indices = @transform_2, window_bounds = array<i64: 128, 640>}, {pipeline_mode = #tpu.pipeline_mode<synchronous>, transform_indices = @transform_3, window_bounds = array<i64: 1, 640>}, {pipeline_mode = #tpu.pipeline_mode<synchronous>, transform_indices = @transform_4, window_bounds = array<i64: 8, 1>}, {pipeline_mode = #tpu.pipeline_mode<synchronous>, transform_indices = @transform_5, window_bounds = array<i64: 8, 128>}]} {
    %c0 = arith.constant 0 : index
    %c0_0 = arith.constant 0 : index
    %0 = vector.load %arg1[%c0, %c0_0] : memref<56x128xbf16, #tpu.memory_space<vmem>>, vector<56x128xbf16>
    %c0_1 = arith.constant 0 : index
    %c0_2 = arith.constant 0 : index
    %1 = vector.load %arg2[%c0_1, %c0_2] : memref<128x640xbf16, #tpu.memory_space<vmem>>, vector<128x640xbf16>
    %cst = arith.constant dense<0.000000e+00> : vector<56x640xf32>
    %2 = tpu.matmul %0, %1, %cst {dimension_numbers = #tpu.dot_dimension_numbers<[1], [0], [0], [1], [0, 0, 1, 1], [], []>} : vector<56x128xbf16>, vector<128x640xbf16>, vector<56x640xf32> -> vector<56x640xf32>
    %c0_3 = arith.constant 0 : index
    %c0_4 = arith.constant 0 : index
    %3 = vector.load %arg4[%c0_3, %c0_4] : memref<1x640xf32, #tpu.memory_space<vmem>>, vector<1x640xf32>
    %4 = vector.broadcast %3 : vector<1x640xf32> to vector<56x640xf32>
    %5 = arith.addf %2, %4 : vector<56x640xf32>
    %c0_5 = arith.constant 0 : index
    %c0_6 = arith.constant 0 : index
    %6 = vector.load %arg7[%c0_5, %c0_6] : memref<56x640xf32, #tpu.memory_space<vmem>>, vector<56x640xf32>
    tpu.vector_store %arg7[%c0_5, %c0_6], %5 {strides = array<i32>} : memref<56x640xf32, #tpu.memory_space<vmem>>, vector<56x640xf32>,
    %c0_7 = arith.constant 0 : index
    %c0_8 = arith.constant 0 : index
    %7 = vector.load %arg3[%c0_7, %c0_8] : memref<128x640xbf16, #tpu.memory_space<vmem>>, vector<128x640xbf16>
    %c0_9 = arith.constant 0 : index
    %c0_10 = arith.constant 0 : index
    %8 = vector.load %arg5[%c0_9, %c0_10] : memref<8x1xi32, #tpu.memory_space<vmem>>, vector<8x1xi32>
    %cst_11 = arith.constant 0.000000e+00 : f32
    %9 = vector.broadcast %cst_11 : f32 to vector<8x128xf32>
    %c0_i32 = arith.constant 0 : i32
    %c8_i32 = arith.constant 8 : i32
    %10 = arith.muli %c0_i32, %c8_i32 : i32
    %11 = arith.index_cast %10 : i32 to index
    %c0_12 = arith.constant 0 : index
    %12 = vector.load %arg7[%11, %c0_12] : memref<56x640xf32, #tpu.memory_space<vmem>>, vector<8x640xf32>
    %13 = arith.truncf %9 : vector<8x128xf32> to vector<8x128xbf16>
    %cst_13 = arith.constant dense<0.000000e+00> : vector<8x640xf32>
    %14 = tpu.matmul %13, %7, %cst_13 {dimension_numbers = #tpu.dot_dimension_numbers<[1], [0], [0], [1], [0, 0, 1, 1], [], []>} : vector<8x128xbf16>, vector<128x640xbf16>, vector<8x640xf32> -> vector<8x640xf32>
    %15 = arith.addf %12, %14 : vector<8x640xf32>
    %16 = vector.extract_strided_slice %15 {offsets = [0, 0], sizes = [8, 384], strides = [1, 1]} : vector<8x640xf32> to vector<8x384xf32>
    %17 = arith.negf %16 : vector<8x384xf32>
    %18 = math.exp %17 : vector<8x384xf32>
    %cst_14 = arith.constant 1.000000e+00 : f32
    %19 = vector.broadcast %cst_14 : f32 to vector<8x384xf32>
    %20 = arith.addf %19, %18 : vector<8x384xf32>
    %21 = arith.divf %19, %20 : vector<8x384xf32>
    %22 = vector.extract_strided_slice %21 {offsets = [0, 0], sizes = [8, 128], strides = [1, 1]} : vector<8x384xf32> to vector<8x128xf32>
    %23 = vector.extract_strided_slice %21 {offsets = [0, 128], sizes = [8, 128], strides = [1, 1]} : vector<8x384xf32> to vector<8x128xf32>
    %24 = vector.extract_strided_slice %21 {offsets = [0, 256], sizes = [8, 128], strides = [1, 1]} : vector<8x384xf32> to vector<8x128xf32>
    %25 = vector.extract_strided_slice %15 {offsets = [0, 384], sizes = [8, 128], strides = [1, 1]} : vector<8x640xf32> to vector<8x128xf32>
    %26 = vector.extract_strided_slice %15 {offsets = [0, 512], sizes = [8, 128], strides = [1, 1]} : vector<8x640xf32> to vector<8x128xf32>
    %27 = arith.maximumf %25, %26 : vector<8x128xf32>
    %28 = arith.mulf %23, %9 : vector<8x128xf32>
    %29 = arith.mulf %22, %27 : vector<8x128xf32>
    %30 = arith.addf %28, %29 : vector<8x128xf32>
    %31 = math.tanh %30 : vector<8x128xf32>
    %32 = arith.mulf %24, %31 : vector<8x128xf32>
    %33 = vector.broadcast %c0_i32 : i32 to vector<8x1xi32>
    %34 = arith.cmpi eq, %8, %33 : vector<8x1xi32>
    %35 = vector.shape_cast %34 : vector<8x1xi1> to vector<8x1xi1>
    %36 = vector.broadcast %35 : vector<8x1xi1> to vector<8x128xi1>
    %37 = arith.select %36, %32, %9 : vector<8x128xi1>, vector<8x128xf32>
    %c1_i32 = arith.constant 1 : i32
    %c8_i32_15 = arith.constant 8 : i32
    %38 = arith.muli %c1_i32, %c8_i32_15 : i32
    %39 = arith.index_cast %38 : i32 to index
    %c0_16 = arith.constant 0 : index
    %40 = vector.load %arg7[%39, %c0_16] : memref<56x640xf32, #tpu.memory_space<vmem>>, vector<8x640xf32>
    %41 = arith.truncf %32 : vector<8x128xf32> to vector<8x128xbf16>
    %cst_17 = arith.constant dense<0.000000e+00> : vector<8x640xf32>
    %42 = tpu.matmul %41, %7, %cst_17 {dimension_numbers = #tpu.dot_dimension_numbers<[1], [0], [0], [1], [0, 0, 1, 1], [], []>} : vector<8x128xbf16>, vector<128x640xbf16>, vector<8x640xf32> -> vector<8x640xf32>
    %43 = arith.addf %40, %42 : vector<8x640xf32>
    %44 = vector.extract_strided_slice %43 {offsets = [0, 0], sizes = [8, 384], strides = [1, 1]} : vector<8x640xf32> to vector<8x384xf32>
    %45 = arith.negf %44 : vector<8x384xf32>
    %46 = math.exp %45 : vector<8x384xf32>
    %cst_18 = arith.constant 1.000000e+00 : f32
    %47 = vector.broadcast %cst_18 : f32 to vector<8x384xf32>
    %48 = arith.addf %47, %46 : vector<8x384xf32>
    %49 = arith.divf %47, %48 : vector<8x384xf32>
    %50 = vector.extract_strided_slice %49 {offsets = [0, 0], sizes = [8, 128], strides = [1, 1]} : vector<8x384xf32> to vector<8x128xf32>
    %51 = vector.extract_strided_slice %49 {offsets = [0, 128], sizes = [8, 128], strides = [1, 1]} : vector<8x384xf32> to vector<8x128xf32>
    %52 = vector.extract_strided_slice %49 {offsets = [0, 256], sizes = [8, 128], strides = [1, 1]} : vector<8x384xf32> to vector<8x128xf32>
    %53 = vector.extract_strided_slice %43 {offsets = [0, 384], sizes = [8, 128], strides = [1, 1]} : vector<8x640xf32> to vector<8x128xf32>
    %54 = vector.extract_strided_slice %43 {offsets = [0, 512], sizes = [8, 128], strides = [1, 1]} : vector<8x640xf32> to vector<8x128xf32>
    %55 = arith.maximumf %53, %54 : vector<8x128xf32>
    %56 = arith.mulf %51, %30 : vector<8x128xf32>
    %57 = arith.mulf %50, %55 : vector<8x128xf32>
    %58 = arith.addf %56, %57 : vector<8x128xf32>
    %59 = math.tanh %58 : vector<8x128xf32>
    %60 = arith.mulf %52, %59 : vector<8x128xf32>
    %61 = vector.broadcast %c1_i32 : i32 to vector<8x1xi32>
    %62 = arith.cmpi eq, %8, %61 : vector<8x1xi32>
    %63 = vector.shape_cast %62 : vector<8x1xi1> to vector<8x1xi1>
    %64 = vector.broadcast %63 : vector<8x1xi1> to vector<8x128xi1>
    %65 = arith.select %64, %60, %37 : vector<8x128xi1>, vector<8x128xf32>
    %c2_i32 = arith.constant 2 : i32
    %c8_i32_19 = arith.constant 8 : i32
    %66 = arith.muli %c2_i32, %c8_i32_19 : i32
    %67 = arith.index_cast %66 : i32 to index
    %c0_20 = arith.constant 0 : index
    %68 = vector.load %arg7[%67, %c0_20] : memref<56x640xf32, #tpu.memory_space<vmem>>, vector<8x640xf32>
    %69 = arith.truncf %60 : vector<8x128xf32> to vector<8x128xbf16>
    %cst_21 = arith.constant dense<0.000000e+00> : vector<8x640xf32>
    %70 = tpu.matmul %69, %7, %cst_21 {dimension_numbers = #tpu.dot_dimension_numbers<[1], [0], [0], [1], [0, 0, 1, 1], [], []>} : vector<8x128xbf16>, vector<128x640xbf16>, vector<8x640xf32> -> vector<8x640xf32>
    %71 = arith.addf %68, %70 : vector<8x640xf32>
    %72 = vector.extract_strided_slice %71 {offsets = [0, 0], sizes = [8, 384], strides = [1, 1]} : vector<8x640xf32> to vector<8x384xf32>
    %73 = arith.negf %72 : vector<8x384xf32>
    %74 = math.exp %73 : vector<8x384xf32>
    %cst_22 = arith.constant 1.000000e+00 : f32
    %75 = vector.broadcast %cst_22 : f32 to vector<8x384xf32>
    %76 = arith.addf %75, %74 : vector<8x384xf32>
    %77 = arith.divf %75, %76 : vector<8x384xf32>
    %78 = vector.extract_strided_slice %77 {offsets = [0, 0], sizes = [8, 128], strides = [1, 1]} : vector<8x384xf32> to vector<8x128xf32>
    %79 = vector.extract_strided_slice %77 {offsets = [0, 128], sizes = [8, 128], strides = [1, 1]} : vector<8x384xf32> to vector<8x128xf32>
    %80 = vector.extract_strided_slice %77 {offsets = [0, 256], sizes = [8, 128], strides = [1, 1]} : vector<8x384xf32> to vector<8x128xf32>
    %81 = vector.extract_strided_slice %71 {offsets = [0, 384], sizes = [8, 128], strides = [1, 1]} : vector<8x640xf32> to vector<8x128xf32>
    %82 = vector.extract_strided_slice %71 {offsets = [0, 512], sizes = [8, 128], strides = [1, 1]} : vector<8x640xf32> to vector<8x128xf32>
    %83 = arith.maximumf %81, %82 : vector<8x128xf32>
    %84 = arith.mulf %79, %58 : vector<8x128xf32>
    %85 = arith.mulf %78, %83 : vector<8x128xf32>
    %86 = arith.addf %84, %85 : vector<8x128xf32>
    %87 = math.tanh %86 : vector<8x128xf32>
    %88 = arith.mulf %80, %87 : vector<8x128xf32>
    %89 = vector.broadcast %c2_i32 : i32 to vector<8x1xi32>
    %90 = arith.cmpi eq, %8, %89 : vector<8x1xi32>
    %91 = vector.shape_cast %90 : vector<8x1xi1> to vector<8x1xi1>
    %92 = vector.broadcast %91 : vector<8x1xi1> to vector<8x128xi1>
    %93 = arith.select %92, %88, %65 : vector<8x128xi1>, vector<8x128xf32>
    %c3_i32 = arith.constant 3 : i32
    %c8_i32_23 = arith.constant 8 : i32
    %94 = arith.muli %c3_i32, %c8_i32_23 : i32
    %95 = arith.index_cast %94 : i32 to index
    %c0_24 = arith.constant 0 : index
    %96 = vector.load %arg7[%95, %c0_24] : memref<56x640xf32, #tpu.memory_space<vmem>>, vector<8x640xf32>
    %97 = arith.truncf %88 : vector<8x128xf32> to vector<8x128xbf16>
    %cst_25 = arith.constant dense<0.000000e+00> : vector<8x640xf32>
    %98 = tpu.matmul %97, %7, %cst_25 {dimension_numbers = #tpu.dot_dimension_numbers<[1], [0], [0], [1], [0, 0, 1, 1], [], []>} : vector<8x128xbf16>, vector<128x640xbf16>, vector<8x640xf32> -> vector<8x640xf32>
    %99 = arith.addf %96, %98 : vector<8x640xf32>
    %100 = vector.extract_strided_slice %99 {offsets = [0, 0], sizes = [8, 384], strides = [1, 1]} : vector<8x640xf32> to vector<8x384xf32>
    %101 = arith.negf %100 : vector<8x384xf32>
    %102 = math.exp %101 : vector<8x384xf32>
    %cst_26 = arith.constant 1.000000e+00 : f32
    %103 = vector.broadcast %cst_26 : f32 to vector<8x384xf32>
    %104 = arith.addf %103, %102 : vector<8x384xf32>
    %105 = arith.divf %103, %104 : vector<8x384xf32>
    %106 = vector.extract_strided_slice %105 {offsets = [0, 0], sizes = [8, 128], strides = [1, 1]} : vector<8x384xf32> to vector<8x128xf32>
    %107 = vector.extract_strided_slice %105 {offsets = [0, 128], sizes = [8, 128], strides = [1, 1]} : vector<8x384xf32> to vector<8x128xf32>
    %108 = vector.extract_strided_slice %105 {offsets = [0, 256], sizes = [8, 128], strides = [1, 1]} : vector<8x384xf32> to vector<8x128xf32>
    %109 = vector.extract_strided_slice %99 {offsets = [0, 384], sizes = [8, 128], strides = [1, 1]} : vector<8x640xf32> to vector<8x128xf32>
    %110 = vector.extract_strided_slice %99 {offsets = [0, 512], sizes = [8, 128], strides = [1, 1]} : vector<8x640xf32> to vector<8x128xf32>
    %111 = arith.maximumf %109, %110 : vector<8x128xf32>
    %112 = arith.mulf %107, %86 : vector<8x128xf32>
    %113 = arith.mulf %106, %111 : vector<8x128xf32>
    %114 = arith.addf %112, %113 : vector<8x128xf32>
    %115 = math.tanh %114 : vector<8x128xf32>
    %116 = arith.mulf %108, %115 : vector<8x128xf32>
    %117 = vector.broadcast %c3_i32 : i32 to vector<8x1xi32>
    %118 = arith.cmpi eq, %8, %117 : vector<8x1xi32>
    %119 = vector.shape_cast %118 : vector<8x1xi1> to vector<8x1xi1>
    %120 = vector.broadcast %119 : vector<8x1xi1> to vector<8x128xi1>
    %121 = arith.select %120, %116, %93 : vector<8x128xi1>, vector<8x128xf32>
    %c4_i32 = arith.constant 4 : i32
    %c8_i32_27 = arith.constant 8 : i32
    %122 = arith.muli %c4_i32, %c8_i32_27 : i32
    %123 = arith.index_cast %122 : i32 to index
    %c0_28 = arith.constant 0 : index
    %124 = vector.load %arg7[%123, %c0_28] : memref<56x640xf32, #tpu.memory_space<vmem>>, vector<8x640xf32>
    %125 = arith.truncf %116 : vector<8x128xf32> to vector<8x128xbf16>
    %cst_29 = arith.constant dense<0.000000e+00> : vector<8x640xf32>
    %126 = tpu.matmul %125, %7, %cst_29 {dimension_numbers = #tpu.dot_dimension_numbers<[1], [0], [0], [1], [0, 0, 1, 1], [], []>} : vector<8x128xbf16>, vector<128x640xbf16>, vector<8x640xf32> -> vector<8x640xf32>
    %127 = arith.addf %124, %126 : vector<8x640xf32>
    %128 = vector.extract_strided_slice %127 {offsets = [0, 0], sizes = [8, 384], strides = [1, 1]} : vector<8x640xf32> to vector<8x384xf32>
    %129 = arith.negf %128 : vector<8x384xf32>
    %130 = math.exp %129 : vector<8x384xf32>
    %cst_30 = arith.constant 1.000000e+00 : f32
    %131 = vector.broadcast %cst_30 : f32 to vector<8x384xf32>
    %132 = arith.addf %131, %130 : vector<8x384xf32>
    %133 = arith.divf %131, %132 : vector<8x384xf32>
    %134 = vector.extract_strided_slice %133 {offsets = [0, 0], sizes = [8, 128], strides = [1, 1]} : vector<8x384xf32> to vector<8x128xf32>
    %135 = vector.extract_strided_slice %133 {offsets = [0, 128], sizes = [8, 128], strides = [1, 1]} : vector<8x384xf32> to vector<8x128xf32>
    %136 = vector.extract_strided_slice %133 {offsets = [0, 256], sizes = [8, 128], strides = [1, 1]} : vector<8x384xf32> to vector<8x128xf32>
    %137 = vector.extract_strided_slice %127 {offsets = [0, 384], sizes = [8, 128], strides = [1, 1]} : vector<8x640xf32> to vector<8x128xf32>
    %138 = vector.extract_strided_slice %127 {offsets = [0, 512], sizes = [8, 128], strides = [1, 1]} : vector<8x640xf32> to vector<8x128xf32>
    %139 = arith.maximumf %137, %138 : vector<8x128xf32>
    %140 = arith.mulf %135, %114 : vector<8x128xf32>
    %141 = arith.mulf %134, %139 : vector<8x128xf32>
    %142 = arith.addf %140, %141 : vector<8x128xf32>
    %143 = math.tanh %142 : vector<8x128xf32>
    %144 = arith.mulf %136, %143 : vector<8x128xf32>
    %145 = vector.broadcast %c4_i32 : i32 to vector<8x1xi32>
    %146 = arith.cmpi eq, %8, %145 : vector<8x1xi32>
    %147 = vector.shape_cast %146 : vector<8x1xi1> to vector<8x1xi1>
    %148 = vector.broadcast %147 : vector<8x1xi1> to vector<8x128xi1>
    %149 = arith.select %148, %144, %121 : vector<8x128xi1>, vector<8x128xf32>
    %c5_i32 = arith.constant 5 : i32
    %c8_i32_31 = arith.constant 8 : i32
    %150 = arith.muli %c5_i32, %c8_i32_31 : i32
    %151 = arith.index_cast %150 : i32 to index
    %c0_32 = arith.constant 0 : index
    %152 = vector.load %arg7[%151, %c0_32] : memref<56x640xf32, #tpu.memory_space<vmem>>, vector<8x640xf32>
    %153 = arith.truncf %144 : vector<8x128xf32> to vector<8x128xbf16>
    %cst_33 = arith.constant dense<0.000000e+00> : vector<8x640xf32>
    %154 = tpu.matmul %153, %7, %cst_33 {dimension_numbers = #tpu.dot_dimension_numbers<[1], [0], [0], [1], [0, 0, 1, 1], [], []>} : vector<8x128xbf16>, vector<128x640xbf16>, vector<8x640xf32> -> vector<8x640xf32>
    %155 = arith.addf %152, %154 : vector<8x640xf32>
    %156 = vector.extract_strided_slice %155 {offsets = [0, 0], sizes = [8, 384], strides = [1, 1]} : vector<8x640xf32> to vector<8x384xf32>
    %157 = arith.negf %156 : vector<8x384xf32>
    %158 = math.exp %157 : vector<8x384xf32>
    %cst_34 = arith.constant 1.000000e+00 : f32
    %159 = vector.broadcast %cst_34 : f32 to vector<8x384xf32>
    %160 = arith.addf %159, %158 : vector<8x384xf32>
    %161 = arith.divf %159, %160 : vector<8x384xf32>
    %162 = vector.extract_strided_slice %161 {offsets = [0, 0], sizes = [8, 128], strides = [1, 1]} : vector<8x384xf32> to vector<8x128xf32>
    %163 = vector.extract_strided_slice %161 {offsets = [0, 128], sizes = [8, 128], strides = [1, 1]} : vector<8x384xf32> to vector<8x128xf32>
    %164 = vector.extract_strided_slice %161 {offsets = [0, 256], sizes = [8, 128], strides = [1, 1]} : vector<8x384xf32> to vector<8x128xf32>
    %165 = vector.extract_strided_slice %155 {offsets = [0, 384], sizes = [8, 128], strides = [1, 1]} : vector<8x640xf32> to vector<8x128xf32>
    %166 = vector.extract_strided_slice %155 {offsets = [0, 512], sizes = [8, 128], strides = [1, 1]} : vector<8x640xf32> to vector<8x128xf32>
    %167 = arith.maximumf %165, %166 : vector<8x128xf32>
    %168 = arith.mulf %163, %142 : vector<8x128xf32>
    %169 = arith.mulf %162, %167 : vector<8x128xf32>
    %170 = arith.addf %168, %169 : vector<8x128xf32>
    %171 = math.tanh %170 : vector<8x128xf32>
    %172 = arith.mulf %164, %171 : vector<8x128xf32>
    %173 = vector.broadcast %c5_i32 : i32 to vector<8x1xi32>
    %174 = arith.cmpi eq, %8, %173 : vector<8x1xi32>
    %175 = vector.shape_cast %174 : vector<8x1xi1> to vector<8x1xi1>
    %176 = vector.broadcast %175 : vector<8x1xi1> to vector<8x128xi1>
    %177 = arith.select %176, %172, %149 : vector<8x128xi1>, vector<8x128xf32>
    %c6_i32 = arith.constant 6 : i32
    %c8_i32_35 = arith.constant 8 : i32
    %178 = arith.muli %c6_i32, %c8_i32_35 : i32
    %179 = arith.index_cast %178 : i32 to index
    %c0_36 = arith.constant 0 : index
    %180 = vector.load %arg7[%179, %c0_36] : memref<56x640xf32, #tpu.memory_space<vmem>>, vector<8x640xf32>
    %181 = arith.truncf %172 : vector<8x128xf32> to vector<8x128xbf16>
    %cst_37 = arith.constant dense<0.000000e+00> : vector<8x640xf32>
    %182 = tpu.matmul %181, %7, %cst_37 {dimension_numbers = #tpu.dot_dimension_numbers<[1], [0], [0], [1], [0, 0, 1, 1], [], []>} : vector<8x128xbf16>, vector<128x640xbf16>, vector<8x640xf32> -> vector<8x640xf32>
    %183 = arith.addf %180, %182 : vector<8x640xf32>
    %184 = vector.extract_strided_slice %183 {offsets = [0, 0], sizes = [8, 384], strides = [1, 1]} : vector<8x640xf32> to vector<8x384xf32>
    %185 = arith.negf %184 : vector<8x384xf32>
    %186 = math.exp %185 : vector<8x384xf32>
    %cst_38 = arith.constant 1.000000e+00 : f32
    %187 = vector.broadcast %cst_38 : f32 to vector<8x384xf32>
    %188 = arith.addf %187, %186 : vector<8x384xf32>
    %189 = arith.divf %187, %188 : vector<8x384xf32>
    %190 = vector.extract_strided_slice %189 {offsets = [0, 0], sizes = [8, 128], strides = [1, 1]} : vector<8x384xf32> to vector<8x128xf32>
    %191 = vector.extract_strided_slice %189 {offsets = [0, 128], sizes = [8, 128], strides = [1, 1]} : vector<8x384xf32> to vector<8x128xf32>
    %192 = vector.extract_strided_slice %189 {offsets = [0, 256], sizes = [8, 128], strides = [1, 1]} : vector<8x384xf32> to vector<8x128xf32>
    %193 = vector.extract_strided_slice %183 {offsets = [0, 384], sizes = [8, 128], strides = [1, 1]} : vector<8x640xf32> to vector<8x128xf32>
    %194 = vector.extract_strided_slice %183 {offsets = [0, 512], sizes = [8, 128], strides = [1, 1]} : vector<8x640xf32> to vector<8x128xf32>
    %195 = arith.maximumf %193, %194 : vector<8x128xf32>
    %196 = arith.mulf %191, %170 : vector<8x128xf32>
    %197 = arith.mulf %190, %195 : vector<8x128xf32>
    %198 = arith.addf %196, %197 : vector<8x128xf32>
    %199 = math.tanh %198 : vector<8x128xf32>
    %200 = arith.mulf %192, %199 : vector<8x128xf32>
    %201 = vector.broadcast %c6_i32 : i32 to vector<8x1xi32>
    %202 = arith.cmpi eq, %8, %201 : vector<8x1xi32>
    %203 = vector.shape_cast %202 : vector<8x1xi1> to vector<8x1xi1>
    %204 = vector.broadcast %203 : vector<8x1xi1> to vector<8x128xi1>
    %205 = arith.select %204, %200, %177 : vector<8x128xi1>, vector<8x128xf32>
    %c7_i32 = arith.constant 7 : i32
    %c0_39 = arith.constant 0 : index
    %c0_40 = arith.constant 0 : index
    %206 = vector.load %arg6[%c0_39, %c0_40] : memref<8x128xf32, #tpu.memory_space<vmem>>, vector<8x128xf32>
    tpu.vector_store %arg6[%c0_39, %c0_40], %205 {strides = array<i32>} : memref<8x128xf32, #tpu.memory_space<vmem>>, vector<8x128xf32>,
    return
  }
  func.func @transform_0(%arg0: i32) -> (i32, i32) {
    %c0_i32 = arith.constant 0 : i32
    %c0_i32_0 = arith.constant 0 : i32
    %c0_i32_1 = arith.constant 0 : i32
    return %c0_i32, %c0_i32_0 : i32, i32
  }
  func.func @transform_1(%arg0: i32) -> (i32, i32) {
    %c0_i32 = arith.constant 0 : i32
    %c0_i32_0 = arith.constant 0 : i32
    %c0_i32_1 = arith.constant 0 : i32
    return %c0_i32, %c0_i32_0 : i32, i32
  }
  func.func @transform_2(%arg0: i32) -> (i32, i32) {
    %c0_i32 = arith.constant 0 : i32
    %c0_i32_0 = arith.constant 0 : i32
    %c0_i32_1 = arith.constant 0 : i32
    return %c0_i32, %c0_i32_0 : i32, i32
  }
  func.func @transform_3(%arg0: i32) -> (i32, i32) {
    %c0_i32 = arith.constant 0 : i32
    %c0_i32_0 = arith.constant 0 : i32
    %c0_i32_1 = arith.constant 0 : i32
    return %c0_i32, %c0_i32_0 : i32, i32
  }
  func.func @transform_4(%arg0: i32) -> (i32, i32) {
    %c0_i32 = arith.constant 0 : i32
    %c0_i32_0 = arith.constant 0 : i32
    %c0_i32_1 = arith.constant 0 : i32
    return %c0_i32, %c0_i32_0 : i32, i32
  }
  func.func @transform_5(%arg0: i32) -> (i32, i32) {
    %c0_i32 = arith.constant 0 : i32
    %c0_i32_0 = arith.constant 0 : i32
    %c0_i32_1 = arith.constant 0 : i32
    return %c0_i32, %c0_i32_0 : i32, i32
  }
}

</mosaic_0001>

<bundles_post_ra>
// kernel: tpu_custom_call.1
= control target key start
LH: loop header
LB: loop body
LE: loop exit
PB: predicated region body
PF: predicated region fallthrough
CT: control target
= control target key end

     0   :  { %10 = vsyncpa [#allocation4], 0  ;;  %s3584_s0 = inlined_call_operand.hbm [shape: bf16[56,128], index: 0, kind: input, shape index: {}]   ;;  %s3585_s1 = inlined_call_operand.hbm [shape: bf16[128,640], index: 1, kind: input, shape index: {}]   ;;  %s3586_s2 = inlined_call_operand.hbm [shape: bf16[128,640], index: 2, kind: input, shape index: {}]   ;;  %s3587_s3 = inlined_call_operand.vmem [shape: f32[1,640], index: 3, kind: input, shape index: {}]   ;;  %s3588_s4 = inlined_call_operand.vmem [shape: s32[8,1], index: 4, kind: input, shape index: {}]   ;;  %s3589_s5 = inlined_call_operand.hbm [shape: f32[8,128], index: 5, kind: output, shape index: {}]  }
   0x1   :  { %11 = vsyncpa [#allocation7], 0 }
   0x2   :  { %12 = vsyncpa [#allocation5], 0  ;;  %s2755_s18 = smov [#allocation6]   ;;  %s2661_s22 = scalar_lea.hbm %s3585_s1, 5120 }
   0x3   :  { %s30_s19 = sshll.u32 %s2755_s18, 4  ;;  %p2662_p0 = scmp.ne.s32.totalorder %s3585_s1, %s2661_s22  ;;  %s31_s19 = int_to_ptr.vmem [resolvable:$true] %s30_s19 }
   0x4   :  { %p2665_p1 = scmp.lt.u32.totalorder %s2661_s22, %s3585_s1 }
   0x6   :  { %p2667_p2 = pnand %p2665_p1, %p2662_p0 }
   0x8   :  { %2670 = shalt.err (!%p2667_p2)
}
   0x9   :  { %s2671_s27 = scalar_lea.vmem %s31_s19, 5120  ;;  %p2676_p4 = scmp.lt.s32.totalorder %s31_s19, %s31_s19 }
   0xa   :  { %p2672_p3 = scmp.ne.s32.totalorder %s31_s19, %s2671_s27  ;;  %p2677_p5 = scmp.lt.s32.totalorder %s2671_s27, %s2671_s27 }
   0xc   :  { %p2678_p6 = por %p2677_p5, %p2676_p4 }
   0xe   :  { %p2679_p7 = pnand %p2678_p6, %p2672_p3 }
  0x10   :  { %2682 = shalt.err (!%p2679_p7)
}
  0x11   :  { %s2756_s28 = smov 320   ;;  %s2757_s29 = smov 20  }
  0x12   :  { %36 = dma.hbm_to_vmem [thread:$0]  %s3585_s1, 5120, %s31_s19, [#allocation7], %s2756_s28, %s2756_s28, %s2757_s29  }
  0x13   :  { %s2758_s7 = smov [#allocation3]   ;;  %s2683_s11 = scalar_lea.hbm %s3584_s0, 448 }
  0x14   :  { %s18_s8 = sshll.u32 %s2758_s7, 4  ;;  %p2684_p8 = scmp.ne.s32.totalorder %s3584_s0, %s2683_s11  ;;  %s19_s8 = int_to_ptr.vmem [resolvable:$true] %s18_s8 }
  0x15   :  { %p2687_p9 = scmp.lt.u32.totalorder %s2683_s11, %s3584_s0 }
  0x17   :  { %p2689_p10 = pnand %p2687_p9, %p2684_p8 }
  0x19   :  { %2692 = shalt.err (!%p2689_p10)
}
  0x1a   :  { %s2693_s16 = scalar_lea.vmem %s19_s8, 448  ;;  %p2698_p12 = scmp.lt.s32.totalorder %s19_s8, %s19_s8 }
  0x1b   :  { %p2694_p11 = scmp.ne.s32.totalorder %s19_s8, %s2693_s16  ;;  %p2699_p13 = scmp.lt.s32.totalorder %s2693_s16, %s2693_s16 }
  0x1d   :  { %p2700_p0 = por %p2699_p13, %p2698_p12 }
  0x1f   :  { %p2701_p1 = pnand %p2700_p0, %p2694_p11 }
  0x21   :  { %2704 = shalt.err (!%p2701_p1)
}
  0x22   :  { %s2759_s1 = smov 64   ;;  %s2760_s17 = smov 4  }
  0x23   :  { %24 = dma.hbm_to_vmem [thread:$0]  %s3584_s0, 448, %s19_s8, [#allocation4], %s2759_s1, %s2759_s1, %s2760_s17  }
  0x24   :  { %s2761_s20 = smov [#allocation8]   ;;  %s2705_s24 = scalar_lea.hbm %s3586_s2, 5120 }
  0x25   :  { %s42_s21 = sshll.u32 %s2761_s20, 4  ;;  %p2706_p2 = scmp.ne.s32.totalorder %s3586_s2, %s2705_s24  ;;  %s43_s21 = int_to_ptr.vmem [resolvable:$true] %s42_s21 }
  0x26   :  { %p2709_p3 = scmp.lt.u32.totalorder %s2705_s24, %s3586_s2 }
  0x28   :  { %p2711_p4 = pnand %p2709_p3, %p2706_p2 }
  0x2a   :  { %2714 = shalt.err (!%p2711_p4)
}
  0x2b   :  { %s2715_s6 = scalar_lea.vmem %s43_s21, 5120  ;;  %p2720_p6 = scmp.lt.s32.totalorder %s43_s21, %s43_s21 }
  0x2c   :  { %p2716_p5 = scmp.ne.s32.totalorder %s43_s21, %s2715_s6  ;;  %p2721_p7 = scmp.lt.s32.totalorder %s2715_s6, %s2715_s6 }
  0x2e   :  { %p2722_p8 = por %p2721_p7, %p2720_p6 }
  0x30   :  { %p2723_p9 = pnand %p2722_p8, %p2716_p5 }
  0x32   :  { %2726 = shalt.err (!%p2723_p9)
}
  0x33   :  { %48 = dma.hbm_to_vmem [thread:$0]  %s3586_s2, 5120, %s43_s21, [#allocation7], %s2756_s28, %s2756_s28, %s2757_s29  }
  0x34   :  { %2749 = dma.done.wait [#allocation4], 448  }
  0x35   :  { %2750 = vsyncadd [#allocation4], 4294966848 }
  0x36   :  { %2751 = dma.done.wait [#allocation7], 10240  }
  0x37   :  { %2752 = vsyncadd [#allocation7], 4294957056  ;;  %v3590_v0 = vmov 0   ;;  %v2406_v1 = vld [vmem:[#allocation6 + $0x4] ss:$20 sps:$4 sm:$0xff]   ;;  %v2861_v42 = vld [vmem:[#allocation3 + $0x8] sm:$0xff]  }
  0x38   :  { %407 = vmatprep.mubr.bf16.mxu0 %v3590_v0  ;;  %478 = vmatprep.mubr.bf16.mxu1 %v3590_v0  ;;  %v2408_v2 = vld [vmem:[#allocation6 + $0xc] ss:$20 sps:$4 sm:$0xff]   ;;  %v2411_v4 = vld [vmem:[#allocation6 + $0x8] ss:$20 sps:$4 sm:$0xff]   ;;  %v2417_v8 = vld [vmem:[#allocation6 + $0x30] ss:$20 sps:$4 sm:$0xff]  }
  0x39   :  { %2404 = vset.pattern.permute.xlu0 %v3590_v0  ;;  %2405 = vset.pattern.permute.xlu1 %v3590_v0  ;;  %v2410_v3 = vld [vmem:[#allocation6] ss:$20 sps:$4 sm:$0xff]   ;;  %v2416_v7 = vld [vmem:[#allocation6 + $0x28] ss:$20 sps:$4 sm:$0xff]   ;;  %v2422_v11 = vld [vmem:[#allocation6 + $0x50] ss:$20 sps:$4 sm:$0xff]  }
  0x3a   :  { %375 = vmatprep.subr.bf16.mxu0 %v2406_v1  ;;  %446 = vmatprep.subr.bf16.mxu1 %v2408_v2  ;;  %v2412_v5 = vld [vmem:[#allocation6 + $0x2c] ss:$20 sps:$4 sm:$0xff]   ;;  %v2414_v6 = vld [vmem:[#allocation6 + $0x34] ss:$20 sps:$4 sm:$0xff]   ;;  %v2420_v10 = vld [vmem:[#allocation6 + $0x5c] ss:$20 sps:$4 sm:$0xff]  }
  0x3b   :  { %376 = vmatpush1.bf16.msra.mxu0 %v2410_v3  ;;  %447 = vmatpush1.bf16.msra.mxu1 %v2411_v4  ;;  %v2418_v9 = vld [vmem:[#allocation6 + $0x54] ss:$20 sps:$4 sm:$0xff]   ;;  %v2423_v12 = vld [vmem:[#allocation6 + $0x58] ss:$20 sps:$4 sm:$0xff]   ;;  %v2424_v13 = vld [vmem:[#allocation6 + $0x7c] ss:$20 sps:$4 sm:$0xff]  }
  0x3c   :  { %377 = vmatprep.subr.bf16.mxu0 %v2412_v5  ;;  %448 = vmatprep.subr.bf16.mxu1 %v2414_v6  ;;  %v2426_v14 = vld [vmem:[#allocation6 + $0x84] ss:$20 sps:$4 sm:$0xff]   ;;  %v2429_v16 = vld [vmem:[#allocation6 + $0x80] ss:$20 sps:$4 sm:$0xff]   ;;  %v2435_v20 = vld [vmem:[#allocation6 + $0xa8] ss:$20 sps:$4 sm:$0xff]  }
  0x3d   :  { %v2428_v15 = vld [vmem:[#allocation6 + $0x78] ss:$20 sps:$4 sm:$0xff]   ;;  %v2434_v19 = vld [vmem:[#allocation6 + $0xa0] ss:$20 sps:$4 sm:$0xff]   ;;  %v2440_v23 = vld [vmem:[#allocation6 + $0xc8] ss:$20 sps:$4 sm:$0xff]  }
  0x3e   :  { %v2430_v17 = vld [vmem:[#allocation6 + $0xa4] ss:$20 sps:$4 sm:$0xff]   ;;  %v2432_v18 = vld [vmem:[#allocation6 + $0xac] ss:$20 sps:$4 sm:$0xff]   ;;  %v2438_v22 = vld [vmem:[#allocation6 + $0xd4] ss:$20 sps:$4 sm:$0xff]  }
  0x3f   :  { %378 = vmatpush1.bf16.msra.mxu0 %v2416_v7  ;;  %449 = vmatpush1.bf16.msra.mxu1 %v2417_v8  ;;  %v2436_v21 = vld [vmem:[#allocation6 + $0xcc] ss:$20 sps:$4 sm:$0xff]   ;;  %v2441_v24 = vld [vmem:[#allocation6 + $0xd0] ss:$20 sps:$4 sm:$0xff]   ;;  %v2442_v25 = vld [vmem:[#allocation6 + $0xf4] ss:$20 sps:$4 sm:$0xff]  }
  0x40   :  { %379 = vmatprep.subr.bf16.mxu0 %v2418_v9  ;;  %450 = vmatprep.subr.bf16.mxu1 %v2420_v10  ;;  %v2444_v26 = vld [vmem:[#allocation6 + $0xfc] ss:$20 sps:$4 sm:$0xff]   ;;  %v2447_v28 = vld [vmem:[#allocation6 + $0xf8] ss:$20 sps:$4 sm:$0xff]   ;;  %v2453_v32 = vld [vmem:[#allocation6 + $0x120] ss:$20 sps:$4 sm:$0xff]  }
  0x41   :  { %v2446_v27 = vld [vmem:[#allocation6 + $0xf0] ss:$20 sps:$4 sm:$0xff]   ;;  %v2452_v31 = vld [vmem:[#allocation6 + $0x118] ss:$20 sps:$4 sm:$0xff]   ;;  %v2846_v36 = vld [vmem:[#allocation8] ss:$20 sps:$4 sm:$0xff]  }
  0x42   :  { %v2448_v29 = vld [vmem:[#allocation6 + $0x11c] ss:$20 sps:$4 sm:$0xff]   ;;  %v2450_v30 = vld [vmem:[#allocation6 + $0x124] ss:$20 sps:$4 sm:$0xff]   ;;  %v2849_v38 = vld [vmem:[#allocation8 + $0x2c] ss:$20 sps:$4 sm:$0xff]  }
  0x43   :  { %380 = vmatpush1.bf16.msra.mxu0 %v2422_v11  ;;  %451 = vmatpush1.bf16.msra.mxu1 %v2423_v12  ;;  %v2455_v33 = vld [vmem:[#allocation6 + $0x10] ss:$20 sps:$4 sm:$0xff]   ;;  %v2459_v37 = vld [vmem:[#allocation6 + $0x38] ss:$20 sps:$4 sm:$0xff]   ;;  %v2853_v39 = vld [vmem:[#allocation8 + $0x28] ss:$20 sps:$4 sm:$0xff]  }
  0x44   :  { %381 = vmatprep.subr.bf16.mxu0 %v2424_v13  ;;  %452 = vmatprep.subr.bf16.mxu1 %v2426_v14  ;;  %v2842_v34 = vld [vmem:[#allocation8 + $0x4] ss:$20 sps:$4 sm:$0xff]   ;;  %v2464_v40 = vld [vmem:[#allocation6 + $0x60] ss:$20 sps:$4 sm:$0xff]   ;;  %v2468_v44 = vld [vmem:[#allocation6 + $0x88] ss:$20 sps:$4 sm:$0xff]  }
  0x45   :  { %3613 = vst [vmem:[#allocation13_spill] sm:$0xff] %v2842_v34  ;;  %v2844_v35 = vld [vmem:[#allocation3] sm:$0xff]   ;;  %v2867_v45 = vld [vmem:[#allocation8 + $0x7c] ss:$20 sps:$4 sm:$0xff]   ;;  %v2872_v46 = vld [vmem:[#allocation8 + $0x78] ss:$20 sps:$4 sm:$0xff]  }
  0x46   :  { %v2857_v41 = vld [vmem:[#allocation8 + $0x54] ss:$20 sps:$4 sm:$0xff]   ;;  %v2863_v43 = vld [vmem:[#allocation8 + $0x50] ss:$20 sps:$4 sm:$0xff]   ;;  %v2477_v51 = vld [vmem:[#allocation6 + $0xd8] ss:$20 sps:$4 sm:$0xff]  }
  0x47   :  { %382 = vmatpush1.bf16.msra.mxu0 %v2428_v15  ;;  %453 = vmatpush1.bf16.msra.mxu1 %v2429_v16  ;;  %v2473_v47 = vld [vmem:[#allocation6 + $0xb0] ss:$20 sps:$4 sm:$0xff]   ;;  %v2472_v49 = vld [vmem:[#allocation3 + $0x10] sm:$0xff]   ;;  %v2883_v52 = vld [vmem:[#allocation8 + $0xcc] ss:$20 sps:$4 sm:$0xff]   ;;  %v3592_v3 = vmov 0.0  }
  0x48   :  { %383 = vmatprep.subr.bf16.mxu0 %v2430_v17  ;;  %454 = vmatprep.subr.bf16.mxu1 %v2432_v18  ;;  %v2875_v48 = vld [vmem:[#allocation8 + $0xa4] ss:$20 sps:$4 sm:$0xff]   ;;  %v2880_v50 = vld [vmem:[#allocation8 + $0xa0] ss:$20 sps:$4 sm:$0xff]   ;;  %v2885_v53 = vld [vmem:[#allocation8 + $0xc8] ss:$20 sps:$4 sm:$0xff]  }
  0x49   :  { %v2482_v54 = vld [vmem:[#allocation6 + $0x100] ss:$20 sps:$4 sm:$0xff]   ;;  %v2481_v56 = vld [vmem:[#allocation3 + $0x18] ss:$0 sps:$4 sm:$0xff]   ;;  %v2894_v57 = vld [vmem:[#allocation8 + $0xf0] ss:$20 sps:$4 sm:$0xff]  }
  0x4a   :  { %v2889_v55 = vld [vmem:[#allocation8 + $0xf4] ss:$20 sps:$4 sm:$0xff]   ;;  %v2897_v59 = vld [vmem:[#allocation8 + $0x11c] ss:$20 sps:$4 sm:$0xff]   ;;  %v2900_v60 = vld [vmem:[#allocation8 + $0x118] ss:$20 sps:$4 sm:$0xff]  }
  0x4b   :  { %384 = vmatpush1.bf16.msra.mxu0 %v2434_v19  ;;  %455 = vmatpush1.bf16.msra.mxu1 %v2435_v20  ;;  %v2486_v58 = vld [vmem:[#allocation6 + $0x128] ss:$20 sps:$4 sm:$0xff]   ;;  %v2903_v61 = vld [vmem:[#allocation8 + $0xc] ss:$20 sps:$4 sm:$0xff]   ;;  %v2916_v1 = vld [vmem:[#allocation8 + $0x10] ss:$20 sps:$4 sm:$0xff]  }
  0x4c   :  { %385 = vmatprep.subr.bf16.mxu0 %v2436_v21  ;;  %456 = vmatprep.subr.bf16.mxu1 %v2438_v22  ;;  %v2910_v62 = vld [vmem:[%s3588_s4] sm:$0xff]  ;;  %v2929_v6 = vld [vmem:[#allocation8 + $0x38] ss:$20 sps:$4 sm:$0xff]   ;;  %v2933_v7 = vld [vmem:[#allocation8 + $0x5c] ss:$20 sps:$4 sm:$0xff]   ;;  %vm2764_vm1 = vmmov 0  }
  0x4d   :  { %3614 = vst [vmem:[#allocation14_spill] sm:$0xff] %v2910_v62  ;;  %vm1029_vm0 = vcmp.eq.s32.totalorder %v2910_v62, 0  ;;  %v2914_v63 = vld [vmem:[#allocation8 + $0x8] ss:$20 sps:$4 sm:$0xff]   ;;  %v2927_v5 = vld [vmem:[#allocation8 + $0x30] ss:$20 sps:$4 sm:$0xff]  }
  0x4e   :  { %v1030_v2 = vsel %vm1029_vm0, 1, %v3590_v0  ;;  %v2921_v4 = vld [vmem:[#allocation8 + $0x34] ss:$20 sps:$4 sm:$0xff]   ;;  %v2939_v8 = vld [vmem:[#allocation8 + $0x58] ss:$20 sps:$4 sm:$0xff]   ;;  %vm1193_vm2 = vcmp.eq.s32.totalorder %v2910_v62, 1 }
  0x4f   :  { %386 = vmatpush1.bf16.msra.mxu0 %v2440_v23  ;;  %457 = vmatpush1.bf16.msra.mxu1 %v2441_v24  ;;  %v2941_v9 = vld [vmem:[#allocation8 + $0x60] ss:$20 sps:$4 sm:$0xff]   ;;  %v2945_v10 = vld [vmem:[#allocation8 + $0x84] ss:$20 sps:$4 sm:$0xff]   ;;  %v2951_v12 = vld [vmem:[#allocation8 + $0x88] ss:$20 sps:$4 sm:$0xff]  }
  0x50   :  { %387 = vmatprep.subr.bf16.mxu0 %v2442_v25  ;;  %458 = vmatprep.subr.bf16.mxu1 %v2444_v26  ;;  %v2949_v11 = vld [vmem:[#allocation8 + $0x80] ss:$20 sps:$4 sm:$0xff]   ;;  %v2960_v14 = vld [vmem:[#allocation8 + $0xa8] ss:$20 sps:$4 sm:$0xff]   ;;  %v2962_v15 = vld [vmem:[#allocation8 + $0xb0] ss:$20 sps:$4 sm:$0xff]  }
  0x51   :  { %1032 = vperm.xlu0 %2404, %v1030_v2   ;;  %v2955_v13 = vld [vmem:[#allocation8 + $0xac] ss:$20 sps:$4 sm:$0xff]   ;;  %v2966_v16 = vld [vmem:[#allocation8 + $0xd4] ss:$20 sps:$4 sm:$0xff]   ;;  %v2970_v17 = vld [vmem:[#allocation8 + $0xd0] ss:$20 sps:$4 sm:$0xff]  }
  0x52   :  { %v2972_v18 = vld [vmem:[#allocation8 + $0xd8] ss:$20 sps:$4 sm:$0xff]   ;;  %v2976_v19 = vld [vmem:[#allocation8 + $0xfc] ss:$20 sps:$4 sm:$0xff]   ;;  %v2982_v21 = vld [vmem:[#allocation8 + $0x100] ss:$20 sps:$4 sm:$0xff]  }
  0x53   :  { %388 = vmatpush1.bf16.msra.mxu0 %v2446_v27  ;;  %459 = vmatpush1.bf16.msra.mxu1 %v2447_v28  ;;  %v2980_v20 = vld [vmem:[#allocation8 + $0xf8] ss:$20 sps:$4 sm:$0xff]   ;;  %v2990_v23 = vld [vmem:[#allocation8 + $0x120] ss:$20 sps:$4 sm:$0xff]   ;;  %v2992_v24 = vld [vmem:[#allocation8 + $0x128] ss:$20 sps:$4 sm:$0xff]  }
  0x54   :  { %389 = vmatprep.subr.bf16.mxu0 %v2448_v29  ;;  %460 = vmatprep.subr.bf16.mxu1 %v2450_v30  ;;  %v2986_v22 = vld [vmem:[#allocation8 + $0x124] ss:$20 sps:$4 sm:$0xff]   ;;  %3616 = vst [vmem:[#allocation16_spill] sm:$0xff] %v2990_v23 }
  0x55   :  { %3615 = vst [vmem:[#allocation15_spill] sm:$0xff] %v2986_v22 }
  0x57   :  { %390 = vmatpush1.bf16.msra.mxu0 %v2452_v31  ;;  %461 = vmatpush1.bf16.msra.mxu1 %v2453_v32  ;;  %v1194_v31 = vsel %vm1193_vm2, 1, %v3590_v0 }
  0x58   :  { %2217 = vmatprep.subr.bf16.mxu0 %v2455_v33  ;;  %878 = vmatprep.subr.bf16.mxu1 %v2842_v34 }
  0x59   :  { %1196 = vperm.xlu0 %2404, %v1194_v31  }
  0x5a   :  { %408 = vmatmul.mubr.bf16.vlgmr.msra.gmra.mrb[0].mxu0 %v2844_v35  ;;  %479 = vmatmul.mubr.bf16.vlgmr.msra.gmra.mrb[0].mxu1 %v2844_v35 }
  0x5b   :  { %2218 = vmatpush3.bf16.msra.mxu0 %v2455_v33  ;;  %879 = vmatpush1.bf16.msra.mxu1 %v2846_v36 }
  0x5c   :  { %2219 = vmatprep.subr.bf16.mxu0 %v2459_v37  ;;  %880 = vmatprep.subr.bf16.mxu1 %v2849_v38 }
  0x5d   :  { %417 = vmatprep.mubr.bf16.mxu0 %v3590_v0  ;;  %488 = vmatprep.mubr.bf16.mxu1 %v3590_v0 }
  0x5f   :  { %2220 = vmatpush3.bf16.msra.mxu0 %v2459_v37  ;;  %881 = vmatpush1.bf16.msra.mxu1 %v2853_v39 }
  0x60   :  { %2221 = vmatprep.subr.bf16.mxu0 %v2464_v40  ;;  %882 = vmatprep.subr.bf16.mxu1 %v2857_v41 }
  0x62   :  { %418 = vmatmul.mubr.bf16.gmra.mrb[4].mxu0 %v2861_v42  ;;  %489 = vmatmul.mubr.bf16.gmra.mrb[4].mxu1 %v2861_v42 }
  0x63   :  { %2222 = vmatpush3.bf16.msra.mxu0 %v2464_v40  ;;  %883 = vmatpush1.bf16.msra.mxu1 %v2863_v43 }
  0x64   :  { %2223 = vmatprep.subr.bf16.mxu0 %v2468_v44  ;;  %884 = vmatprep.subr.bf16.mxu1 %v2867_v45 }
  0x65   :  { %427 = vmatprep.mubr.bf16.mxu0 %v3590_v0  ;;  %498 = vmatprep.mubr.bf16.mxu1 %v3590_v0 }
  0x67   :  { %2224 = vmatpush3.bf16.msra.mxu0 %v2468_v44  ;;  %885 = vmatpush1.bf16.msra.mxu1 %v2872_v46 }
  0x68   :  { %2225 = vmatprep.subr.bf16.mxu0 %v2473_v47  ;;  %886 = vmatprep.subr.bf16.mxu1 %v2875_v48 }
  0x6a   :  { %428 = vmatmul.mubr.bf16.gmra.mrb[8].mxu0 %v2472_v49  ;;  %499 = vmatmul.mubr.bf16.gmra.mrb[8].mxu1 %v2472_v49 }
  0x6b   :  { %2226 = vmatpush3.bf16.msra.mxu0 %v2473_v47  ;;  %887 = vmatpush1.bf16.msra.mxu1 %v2880_v50 }
  0x6c   :  { %2227 = vmatprep.subr.bf16.mxu0 %v2477_v51  ;;  %888 = vmatprep.subr.bf16.mxu1 %v2883_v52 }
  0x6d   :  { %437 = vmatprep.mubr.bf16.mxu0 %v3590_v0  ;;  %508 = vmatprep.mubr.bf16.mxu1 %v3590_v0 }
  0x6f   :  { %2228 = vmatpush3.bf16.msra.mxu0 %v2477_v51  ;;  %889 = vmatpush1.bf16.msra.mxu1 %v2885_v53 }
  0x70   :  { %2229 = vmatprep.subr.bf16.mxu0 %v2482_v54  ;;  %890 = vmatprep.subr.bf16.mxu1 %v2889_v55 }
  0x72   :  { %438 = vmatmul.mubr.bf16.gmra.mrb[12].mxu0 %v2481_v56  ;;  %509 = vmatmul.mubr.bf16.gmra.mrb[12].mxu1 %v2481_v56 }
  0x73   :  { %2230 = vmatpush3.bf16.msra.mxu0 %v2482_v54  ;;  %891 = vmatpush1.bf16.msra.mxu1 %v2894_v57  ;;  %v120_v54 = vlaneseq }
  0x74   :  { %2231 = vmatprep.subr.bf16.mxu0 %v2486_v58  ;;  %892 = vmatprep.subr.bf16.mxu1 %v2897_v59 }
  0x75   :  { %2233 = vmatprep.mubr.bf16.mxu0 %v2844_v35  ;;  %910 = vmatprep.mubr.bf16.mxu1 %v3590_v0 }
  0x77   :  { %2232 = vmatpush3.bf16.msra.mxu0 %v2486_v58  ;;  %893 = vmatpush1.bf16.msra.mxu1 %v2900_v60 }
  0x78   :  { %919 = vmatprep.subr.bf16.mxu0 %v2903_v61  ;;  %2241 = vmatprep.subr.bf16.mxu1 %v3592_v3 }
  0x7a   :  { %2234 = vmatmul.mubr.bf16.vlgmr.msra.gmra.mrb[16].mxu0 %v2861_v42  ;;  %911 = vmatmul.mubr.bf16.vlgmr.msra.gmra.mrb[16].mxu1 %v3590_v0 }
  0x7b   :  { %920 = vmatpush1.bf16.msra.mxu0 %v2914_v63  ;;  %2242 = vmatpush3.bf16.msra.mxu1 %v2916_v1 }
  0x7c   :  { %921 = vmatprep.subr.bf16.mxu0 %v2921_v4  ;;  %2243 = vmatprep.subr.bf16.mxu1 %v3592_v3 }
  0x7d   :  { %2237 = vmatprep.mubr.bf16.mxu0 %v2472_v49  ;;  %2257 = vmatprep.mubr.msk.bf16.mxu1 %vm2764_vm1, %v3592_v3 }
  0x7f   :  { %922 = vmatpush1.bf16.msra.mxu0 %v2927_v5  ;;  %2244 = vmatpush3.bf16.msra.mxu1 %v2929_v6 }
  0x80   :  { %923 = vmatprep.subr.bf16.mxu0 %v2933_v7  ;;  %2245 = vmatprep.subr.bf16.mxu1 %v3592_v3 }
  0x82   :  { %2238 = vmatmul.mubr.bf16.gmra.mrb[20].mxu0 %v2481_v56 }
  0x83   :  { %924 = vmatpush1.bf16.msra.mxu0 %v2939_v8  ;;  %2246 = vmatpush3.bf16.msra.mxu1 %v2941_v9 }
  0x84   :  { %925 = vmatprep.subr.bf16.mxu0 %v2945_v10  ;;  %2247 = vmatprep.subr.bf16.mxu1 %v3592_v3 }
  0x85   :  { %951 = vmatprep.mubr.bf16.mxu0 %v3590_v0 }
  0x87   :  { %926 = vmatpush1.bf16.msra.mxu0 %v2949_v11  ;;  %2248 = vmatpush3.bf16.msra.mxu1 %v2951_v12 }
  0x88   :  { %927 = vmatprep.subr.bf16.mxu0 %v2955_v13  ;;  %2249 = vmatprep.subr.bf16.mxu1 %v3592_v3 }
  0x8b   :  { %928 = vmatpush1.bf16.msra.mxu0 %v2960_v14  ;;  %2250 = vmatpush3.bf16.msra.mxu1 %v2962_v15 }
  0x8c   :  { %929 = vmatprep.subr.bf16.mxu0 %v2966_v16  ;;  %2251 = vmatprep.subr.bf16.mxu1 %v3592_v3 }
  0x8f   :  { %930 = vmatpush1.bf16.msra.mxu0 %v2970_v17  ;;  %2252 = vmatpush3.bf16.msra.mxu1 %v2972_v18 }
  0x90   :  { %931 = vmatprep.subr.bf16.mxu0 %v2976_v19  ;;  %2253 = vmatprep.subr.bf16.mxu1 %v3592_v3 }
  0x93   :  { %932 = vmatpush1.bf16.msra.mxu0 %v2980_v20  ;;  %2254 = vmatpush3.bf16.msra.mxu1 %v2982_v21 }
  0x94   :  { %933 = vmatprep.subr.bf16.mxu0 %v2986_v22  ;;  %2255 = vmatprep.subr.bf16.mxu1 %v3592_v3 }
  0x97   :  { %934 = vmatpush1.bf16.msra.mxu0 %v2990_v23  ;;  %2256 = vmatpush3.bf16.msra.mxu1 %v2992_v24 }
  0x98   :  { %1042 = vmatprep.subr.bf16.mxu0 %v2842_v34  ;;  %1083 = vmatprep.subr.bf16.mxu1 %v2903_v61 }
  0x9a   :  { %952 = vmatmul.mubr.bf16.vlgmr.msra.gmra.mrb[24].mxu0 %v3590_v0  ;;  %2258 = vmatmul.mubr.bf16.vlgmr.msra.gmra.mrb[20].mxu1 %v3590_v0 }
  0x9b   :  { %1043 = vmatpush1.bf16.msra.mxu0 %v2846_v36  ;;  %1084 = vmatpush1.bf16.msra.mxu1 %v2914_v63 }
  0x9c   :  { %1044 = vmatprep.subr.bf16.mxu0 %v2849_v38  ;;  %1085 = vmatprep.subr.bf16.mxu1 %v2921_v4 }
  0x9d   :  { %1074 = vmatprep.mubr.bf16.mxu0 %v3590_v0  ;;  %1115 = vmatprep.mubr.bf16.mxu1 %v3590_v0 }
  0x9f   :  { %1045 = vmatpush1.bf16.msra.mxu0 %v2853_v39  ;;  %1086 = vmatpush1.bf16.msra.mxu1 %v2927_v5 }
  0xa0   :  { %1046 = vmatprep.subr.bf16.mxu0 %v2857_v41  ;;  %1087 = vmatprep.subr.bf16.mxu1 %v2933_v7 }
  0xa3   :  { %1047 = vmatpush1.bf16.msra.mxu0 %v2863_v43  ;;  %1088 = vmatpush1.bf16.msra.mxu1 %v2939_v8 }
  0xa4   :  { %1048 = vmatprep.subr.bf16.mxu0 %v2867_v45  ;;  %1089 = vmatprep.subr.bf16.mxu1 %v2945_v10 }
  0xa7   :  { %1049 = vmatpush1.bf16.msra.mxu0 %v2872_v46  ;;  %1090 = vmatpush1.bf16.msra.mxu1 %v2949_v11 }
  0xa8   :  { %1050 = vmatprep.subr.bf16.mxu0 %v2875_v48  ;;  %1091 = vmatprep.subr.bf16.mxu1 %v2955_v13 }
  0xab   :  { %1051 = vmatpush1.bf16.msra.mxu0 %v2880_v50  ;;  %1092 = vmatpush1.bf16.msra.mxu1 %v2960_v14 }
  0xac   :  { %1052 = vmatprep.subr.bf16.mxu0 %v2883_v52  ;;  %1093 = vmatprep.subr.bf16.mxu1 %v2966_v16 }
  0xaf   :  { %1053 = vmatpush1.bf16.msra.mxu0 %v2885_v53  ;;  %1094 = vmatpush1.bf16.msra.mxu1 %v2970_v17 }
  0xb0   :  { %1054 = vmatprep.subr.bf16.mxu0 %v2889_v55  ;;  %1095 = vmatprep.subr.bf16.mxu1 %v2976_v19 }
  0xb3   :  { %1055 = vmatpush1.bf16.msra.mxu0 %v2894_v57  ;;  %1096 = vmatpush1.bf16.msra.mxu1 %v2980_v20 }
  0xb4   :  { %1056 = vmatprep.subr.bf16.mxu0 %v2897_v59  ;;  %1097 = vmatprep.subr.bf16.mxu1 %v2986_v22 }
  0xb7   :  { %1057 = vmatpush1.bf16.msra.mxu0 %v2900_v60  ;;  %1098 = vmatpush1.bf16.msra.mxu1 %v2990_v23 }
  0xb8   :  { %2261 = vmatprep.subr.bf16.mxu0 %v3592_v3  ;;  %1206 = vmatprep.subr.bf16.mxu1 %v2842_v34 }
 0x12d   :  { %v409_v25 = vpop.f32.mrb[0].mxu0  ;;  %v3036_v26 = vpop.f32.mrb[0].mxu1 }
 0x12e   :  { %v411_v27 = vpop.f32.mrb[1].mxu0  ;;  %v3038_v28 = vpop.f32.mrb[1].mxu1 }
 0x12f   :  { %v3041_v29 = vpop.f32.mrb[2].mxu0  ;;  %v3043_v30 = vpop.f32.mrb[2].mxu1 }
 0x130   :  { %3617 = vst [vmem:[#allocation17_spill] sm:$0xff] %v3041_v29  ;;  %3618 = vst [vmem:[#allocation18_spill] sm:$0xff] %v3043_v30  ;;  %v3046_v32 = vpop.f32.mrb[3].mxu0  ;;  %v3048_v33 = vpop.f32.mrb[3].mxu1 }
 0x131   :  { %3619 = vst [vmem:[#allocation19_spill] sm:$0xff] %v3046_v32  ;;  %3620 = vst [vmem:[#allocation20_spill] sm:$0xff] %v3048_v33 }
 0x135   :  { %v3050_v35 = vpop.f32.mrb[4].mxu0  ;;  %v3052_v37 = vpop.f32.mrb[4].mxu1 }
 0x136   :  { %3621 = vst [vmem:[#allocation21_spill] sm:$0xff] %v3050_v35  ;;  %3622 = vst [vmem:[#allocation22_spill] sm:$0xff] %v3052_v37  ;;  %v3054_v40 = vpop.f32.mrb[5].mxu0  ;;  %v3056_v42 = vpop.f32.mrb[5].mxu1 }
 0x137   :  { %3623 = vst [vmem:[#allocation23_spill] sm:$0xff] %v3054_v40  ;;  %3624 = vst [vmem:[#allocation24_spill] sm:$0xff] %v3056_v42  ;;  %v3058_v44 = vpop.f32.mrb[6].mxu0  ;;  %v3060_v47 = vpop.f32.mrb[6].mxu1 }
 0x138   :  { %3625 = vst [vmem:[#allocation25_spill] sm:$0xff] %v3058_v44  ;;  %3626 = vst [vmem:[#allocation26_spill] sm:$0xff] %v3060_v47  ;;  %v3062_v49 = vpop.f32.mrb[7].mxu0  ;;  %v3064_v51 = vpop.f32.mrb[7].mxu1  ;;  %v121_v44 = vshrl.u32 %v120_v54, 7 }
 0x139   :  { %3627 = vst [vmem:[#allocation27_spill] sm:$0xff] %v3062_v49  ;;  %3628 = vst [vmem:[#allocation28_spill] sm:$0xff] %v3064_v51 }
 0x13a   :  { %v122_v49 = vsub.s32 0, %v121_v44  ;;  %v126_v51 = vsub.s32 1, %v121_v44 }
 0x13d   :  { %v3066_v56 = vpop.f32.mrb[8].mxu0  ;;  %v3068_v58 = vpop.f32.mrb[8].mxu1 }
 0x13e   :  { %3629 = vst [vmem:[#allocation29_spill] sm:$0xff] %v3066_v56  ;;  %3630 = vst [vmem:[#allocation30_spill] sm:$0xff] %v3068_v58  ;;  %v3070_v2 = vpop.f32.mrb[9].mxu0  ;;  %v3072_v31 = vpop.f32.mrb[9].mxu1  ;;  %v118_v56 = vld [vmem:[%s3587_s3] sm:$0x1f] }
 0x13f   :  { %3631 = vst [vmem:[#allocation31_spill] sm:$0xff] %v3070_v2  ;;  %3632 = vst [vmem:[#allocation32_spill] sm:$0xff] %v3072_v31  ;;  %v3074_v0 = vpop.f32.mrb[10].mxu0  ;;  %v3076_v3 = vpop.f32.mrb[10].mxu1  ;;  %v138_v58 = vsub.s32 4, %v121_v44  ;;  %v3085_v40 = vrot.slane %v118_v56, %v122_v49  ;;  %v3087_v2 = vrot.slane %v118_v56, %v126_v51 }
 0x140   :  { %3633 = vst [vmem:[#allocation33_spill] sm:$0xff] %v3074_v0  ;;  %3634 = vst [vmem:[#allocation34_spill] sm:$0xff] %v3076_v3  ;;  %v3078_v42 = vpop.f32.mrb[11].mxu0  ;;  %v3080_v47 = vpop.f32.mrb[11].mxu1 }
 0x141   :  { %3635 = vst [vmem:[#allocation35_spill] sm:$0xff] %v3078_v42  ;;  %3636 = vst [vmem:[#allocation36_spill] sm:$0xff] %v3080_v47  ;;  %v139_v31 = vrot.slane %v118_v56, %v138_v58  ;;  %v410_v0 = vadd.f32 %v409_v25, %v3085_v40  ;;  %v412_v54 = vadd.f32 %v411_v27, %v3087_v2 }
 0x142   :  { %3637 = vst [vmem:[#allocation37_spill] sm:$0xff] %v3085_v40  ;;  %3638 = vst [vmem:[#allocation38_spill] sm:$0xff] %v3087_v2 }
 0x14d   :  { %v2235_v3 = vpop.f32.mrb[16].mxu0  ;;  %v912_v42 = vpop.f32.mrb[16].mxu1 }
 0x14e   :  { %v3091_v37 = vadd.f32 %v2235_v3, %v139_v31  ;;  %v1000_v47 = vadd.f32 %v912_v42, %v410_v0  ;;  %v551_v35 = vpop.f32.mrb[17].mxu0  ;;  %v914_v33 = vpop.f32.mrb[17].mxu1 }
 0x14f   :  { %v1001_v32 = vadd.f32 %v914_v33, %v412_v54  ;;  %v2236_v30 = vpop.f32.mrb[18].mxu0  ;;  %v916_v29 = vpop.f32.mrb[18].mxu1 }
 0x150   :  { %3639 = vst [vmem:[#allocation39_spill] sm:$0xff] %v3091_v37  ;;  %v3093_v62 = vadd.f32 %v2236_v30, %v139_v31  ;;  %v554_v49 = vpop.f32.mrb[19].mxu0  ;;  %v917_v51 = vpop.f32.mrb[19].mxu1  ;;  %v2121_v25 = vmul.f32 -1.442695, %v1000_v47 }
 0x151   :  { %v2122_v34 = vmul.f32 -1.442695, %v1001_v32  ;;  %v3095_v58 = vadd.f32 %v554_v49, %v139_v31  ;;  %v130_v51 = vsub.s32 2, %v121_v44  ;;  %v134_v49 = vsub.s32 3, %v121_v44 }
 0x152   :  { %3640 = vst [vmem:[#allocation40_spill] sm:$0xff] %v3093_v62 }
 0x153   :  { %3641 = vst [vmem:[#allocation41_spill] sm:$0xff] %v3095_v58  ;;  %2522 = vpow2.f32 %v2122_v34  ;;  %v3103_v47 = vrot.slane %v118_v56, %v130_v51  ;;  %v3105_v34 = vrot.slane %v118_v56, %v134_v49 }
 0x154   :  { %2524 = vpow2.f32 %v2121_v25 }
 0x155   :  { %v2239_v27 = vpop.f32.mrb[20].mxu0  ;;  %3645 = vst [vmem:[#allocation45_spill] sm:$0xff] %v3103_v47  ;;  %3646 = vst [vmem:[#allocation46_spill] sm:$0xff] %v3105_v34  ;;  %v481_v25 = vadd.f32 %v3036_v26, %v3103_v47 }
 0x156   :  { %v3097_v2 = vadd.f32 %v2239_v27, %v139_v31  ;;  %v567_v3 = vpop.f32.mrb[21].mxu0  ;;  %v552_v27 = vadd.f32 %v551_v35, %v139_v31 }
 0x157   :  { %v3099_v0 = vadd.f32 %v567_v3, %v139_v31  ;;  %v2240_v42 = vpop.f32.mrb[22].mxu0  ;;  %v483_v3 = vadd.f32 %v3038_v28, %v3105_v34 }
 0x158   :  { %3642 = vst [vmem:[#allocation42_spill] sm:$0xff] %v3097_v2  ;;  %v570_v33 = vpop.f32.mrb[23].mxu0 }
 0x159   :  { %3643 = vst [vmem:[#allocation43_spill] sm:$0xff] %v3099_v0  ;;  %v3101_v54 = vadd.f32 %v570_v33, %v139_v31 }
 0x15b   :  { %3644 = vst [vmem:[#allocation44_spill] sm:$0xff] %v3101_v54 }
 0x15d   :  { %v2523_v29 = vpop.eup %2522 }
 0x15e   :  { %v2525_v30 = vpop.eup %2524  ;;  %v1015_v62 = vadd.f32 1.0, %v2523_v29 }
 0x15f   :  { %v1014_v32 = vadd.f32 1.0, %v2525_v30 }
 0x160   :  { %2526 = vrcp.f32 %v1015_v62 }
 0x161   :  { %2528 = vrcp.f32 %v1014_v32 }
 0x16a   :  { %v2527_v0 = vpop.eup %2526 }
 0x16b   :  { %v2529_v58 = vpop.eup %2528  ;;  %v1024_v26 = vmul.f32 0.0, %v2527_v0  ;;  %v3647_v0 = vmov 0.0  }
 0x16d   :  { %v953_v42 = vpop.f32.mrb[24].mxu0  ;;  %v994_v33 = vpop.f32.mrb[20].mxu1 }
 0x16e   :  { %v1002_v2 = vadd.f32 %v953_v42, %v481_v25  ;;  %v1004_v29 = vadd.f32 %v994_v33, %v552_v27  ;;  %v955_v54 = vpop.f32.mrb[25].mxu0  ;;  %v2259_v30 = vpop.f32.mrb[21].mxu1  ;;  %v3651_v42 = vld [vmem:[#allocation17_spill] sm:$0xff] }
 0x16f   :  { %v1003_v44 = vadd.f32 %v955_v54, %v483_v3  ;;  %v957_v62 = vpop.f32.mrb[26].mxu0  ;;  %v997_v51 = vpop.f32.mrb[22].mxu1  ;;  %v414_v33 = vadd.f32 %v3651_v42, %v3085_v40 }
 0x170   :  { %v2123_v32 = vmul.f32 -1.442695, %v1002_v2  ;;  %v958_v56 = vpop.f32.mrb[27].mxu0  ;;  %v2260_v49 = vpop.f32.mrb[23].mxu1  ;;  %v3654_v62 = vld [vmem:[#allocation19_spill] sm:$0xff] }
 0x171   :  { %v1023_v37 = vmax.f32 %v1003_v44, %v1004_v29  ;;  %v3652_v29 = vld [vmem:[#allocation18_spill] sm:$0xff]  ;;  %v3656_v56 = vld [vmem:[#allocation20_spill] sm:$0xff] }
 0x172   :  { %2530 = vpow2.f32 %v2123_v32  ;;  %v485_v30 = vadd.f32 %v3652_v29, %v3103_v47  ;;  %v3653_v44 = vld [vmem:[#allocation38_spill] sm:$0xff] }
 0x173   :  { %v1025_v35 = vmul.f32 %v2529_v58, %v1023_v37  ;;  %v3648_v37 = vmov 0   ;;  %v3649_v58 = vld [vmem:[#allocation13_spill] sm:$0xff]  ;;  %v416_v51 = vadd.f32 %v3654_v62, %v3653_v44  ;;  %v3655_v32 = vld [vmem:[#allocation46_spill] sm:$0xff] }
 0x174   :  { %v487_v49 = vadd.f32 %v3656_v56, %v3655_v32 }
 0x175   :  { %v3111_v31 = vadd.f32 %v1025_v35, %v1024_v26 }
 0x177   :  { %2532 = vtanh.f32 %v3111_v31 }
 0x17c   :  { %v2531_v28 = vpop.eup %2530 }
 0x17d   :  { %v1016_v34 = vadd.f32 1.0, %v2531_v28 }
 0x17f   :  { %2534 = vrcp.f32 %v1016_v34  ;;  %v3650_v34 = vld [vmem:[#allocation14_spill] sm:$0xff] }
 0x180   :  { %vm1357_vm3 = vcmp.eq.s32.totalorder %v3650_v34, 2 }
 0x181   :  { %v2533_v25 = vpop.eup %2532  ;;  %v1358_v3 = vsel %vm1357_vm3, 1, %v3648_v37 }
 0x182   :  { %1360 = vperm.xlu1 %2405, %v1358_v3  }
 0x189   :  { %v2535_v54 = vpop.eup %2534 }
 0x18a   :  { %v3114_v27 = vmul.f32 %v2535_v54, %v2533_v25 }
 0x18c   :  { %v1041_v2 = vpack.c.bf16 %v3114_v27, %v3114_v27 }
 0x18e   :  { %1075 = vmatmul.mubr.bf16.vlgmr.msra.gmra.mrb[28].mxu0 %v1041_v2  ;;  %1116 = vmatmul.mubr.bf16.vlgmr.msra.gmra.mrb[24].mxu1 %v1041_v2 }
 0x18f   :  { %2262 = vmatpush3.bf16.msra.mxu0 %v2916_v1  ;;  %2277 = vmatprep.mubr.msk.bf16.mxu0 %vm2764_vm1, %v3647_v0 }
 0x190   :  { %2263 = vmatprep.subr.bf16.mxu0 %v3647_v0  ;;  %1207 = vmatpush1.bf16.msra.mxu1 %v2846_v36 }
 0x191   :  { %1208 = vmatprep.subr.bf16.mxu1 %v2849_v38  ;;  %1238 = vmatprep.mubr.bf16.mxu1 %v3648_v37 }
 0x193   :  { %2264 = vmatpush3.bf16.msra.mxu0 %v2929_v6 }
 0x194   :  { %2265 = vmatprep.subr.bf16.mxu0 %v3647_v0  ;;  %1209 = vmatpush1.bf16.msra.mxu1 %v2853_v39 }
 0x195   :  { %1210 = vmatprep.subr.bf16.mxu1 %v2857_v41 }
 0x197   :  { %2266 = vmatpush3.bf16.msra.mxu0 %v2941_v9 }
 0x198   :  { %2267 = vmatprep.subr.bf16.mxu0 %v3647_v0  ;;  %1211 = vmatpush1.bf16.msra.mxu1 %v2863_v43 }
 0x199   :  { %1212 = vmatprep.subr.bf16.mxu1 %v2867_v45 }
 0x19b   :  { %2268 = vmatpush3.bf16.msra.mxu0 %v2951_v12 }
 0x19c   :  { %2269 = vmatprep.subr.bf16.mxu0 %v3647_v0  ;;  %1213 = vmatpush1.bf16.msra.mxu1 %v2872_v46 }
 0x19d   :  { %1214 = vmatprep.subr.bf16.mxu1 %v2875_v48 }
 0x19f   :  { %2270 = vmatpush3.bf16.msra.mxu0 %v2962_v15 }
 0x1a0   :  { %2271 = vmatprep.subr.bf16.mxu0 %v3647_v0  ;;  %1215 = vmatpush1.bf16.msra.mxu1 %v2880_v50 }
 0x1a1   :  { %1216 = vmatprep.subr.bf16.mxu1 %v2883_v52 }
 0x1a3   :  { %2272 = vmatpush3.bf16.msra.mxu0 %v2972_v18 }
 0x1a4   :  { %2273 = vmatprep.subr.bf16.mxu0 %v3647_v0  ;;  %1217 = vmatpush1.bf16.msra.mxu1 %v2885_v53 }
 0x1a5   :  { %1218 = vmatprep.subr.bf16.mxu1 %v2889_v55 }
 0x1a7   :  { %2274 = vmatpush3.bf16.msra.mxu0 %v2982_v21 }
 0x1a8   :  { %2275 = vmatprep.subr.bf16.mxu0 %v3647_v0  ;;  %1219 = vmatpush1.bf16.msra.mxu1 %v2894_v57 }
 0x1a9   :  { %1220 = vmatprep.subr.bf16.mxu1 %v2897_v59 }
 0x1ab   :  { %2276 = vmatpush3.bf16.msra.mxu0 %v2992_v24 }
 0x1ac   :  { %1247 = vmatprep.subr.bf16.mxu0 %v2903_v61  ;;  %1221 = vmatpush1.bf16.msra.mxu1 %v2900_v60 }
 0x1ad   :  { %2281 = vmatprep.subr.bf16.mxu1 %v3647_v0 }
 0x1ae   :  { %2278 = vmatmul.mubr.bf16.vlgmr.msra.gmra.mrb[32].mxu0 %v1041_v2 }
 0x1af   :  { %1248 = vmatpush1.bf16.msra.mxu0 %v2914_v63  ;;  %1279 = vmatprep.mubr.bf16.mxu0 %v3648_v37 }
 0x1b0   :  { %1249 = vmatprep.subr.bf16.mxu0 %v2921_v4 }
 0x1b3   :  { %1250 = vmatpush1.bf16.msra.mxu0 %v2927_v5 }
 0x1b4   :  { %1251 = vmatprep.subr.bf16.mxu0 %v2933_v7 }
 0x1b7   :  { %1252 = vmatpush1.bf16.msra.mxu0 %v2939_v8 }
 0x1b8   :  { %1253 = vmatprep.subr.bf16.mxu0 %v2945_v10 }
 0x1bb   :  { %1254 = vmatpush1.bf16.msra.mxu0 %v2949_v11 }
 0x1bc   :  { %1255 = vmatprep.subr.bf16.mxu0 %v2955_v13 }
 0x1bf   :  { %1256 = vmatpush1.bf16.msra.mxu0 %v2960_v14 }
 0x1c0   :  { %1257 = vmatprep.subr.bf16.mxu0 %v2966_v16 }
 0x1c3   :  { %1258 = vmatpush1.bf16.msra.mxu0 %v2970_v17 }
 0x1c4   :  { %1259 = vmatprep.subr.bf16.mxu0 %v2976_v19 }
 0x1c7   :  { %1260 = vmatpush1.bf16.msra.mxu0 %v2980_v20 }
 0x1c8   :  { %1261 = vmatprep.subr.bf16.mxu0 %v2986_v22 }
 0x1cb   :  { %1262 = vmatpush1.bf16.msra.mxu0 %v2990_v23 }
 0x1cc   :  { %1370 = vmatprep.subr.bf16.mxu0 %v3649_v58 }
 0x261   :  { %v1076_v26 = vpop.f32.mrb[28].mxu0  ;;  %v1117_v35 = vpop.f32.mrb[24].mxu1 }
 0x262   :  { %v1164_v28 = vadd.f32 %v1076_v26, %v414_v33  ;;  %v1166_v25 = vadd.f32 %v1117_v35, %v485_v30  ;;  %v1078_v54 = vpop.f32.mrb[29].mxu0  ;;  %v1119_v2 = vpop.f32.mrb[25].mxu1 }
 0x263   :  { %v1165_v34 = vadd.f32 %v1078_v54, %v416_v51  ;;  %v1167_v3 = vadd.f32 %v1119_v2, %v487_v49  ;;  %v1080_v58 = vpop.f32.mrb[30].mxu0  ;;  %v1121_v23 = vpop.f32.mrb[26].mxu1  ;;  %v3657_v51 = vld [vmem:[#allocation41_spill] sm:$0xff] }
 0x264   :  { %v1081_v42 = vpop.f32.mrb[31].mxu0  ;;  %v1122_v40 = vpop.f32.mrb[27].mxu1  ;;  %v2124_v29 = vmul.f32 -1.442695, %v1164_v28  ;;  %v2126_v47 = vmul.f32 -1.442695, %v1166_v25 }
 0x265   :  { %v2125_v22 = vmul.f32 -1.442695, %v1165_v34 }
 0x267   :  { %2536 = vpow2.f32 %v2125_v22 }
 0x268   :  { %2538 = vpow2.f32 %v2124_v29 }
 0x269   :  { %2540 = vpow2.f32 %v2126_v47  ;;  %v1033_v47 = vpop.permute.xlu0 %1032 }
 0x26a   :  { %vm1034_vm4 = vcmp.eq.s32.totalorder %v1033_v47, 1 }
 0x271   :  { %v2537_v62 = vpop.eup %2536 }
 0x272   :  { %v2539_v44 = vpop.eup %2538  ;;  %v1179_v56 = vadd.f32 1.0, %v2537_v62 }
 0x273   :  { %v1178_v32 = vadd.f32 1.0, %v2539_v44  ;;  %v2541_v30 = vpop.eup %2540  ;;  %v1197_v44 = vpop.permute.xlu0 %1196 }
 0x274   :  { %2542 = vrcp.f32 %v1179_v56  ;;  %v1180_v22 = vadd.f32 1.0, %v2541_v30  ;;  %vm1198_vm5 = vcmp.eq.s32.totalorder %v1197_v44, 1  ;;  %v3667_v30 = vld [vmem:[#allocation23_spill] sm:$0xff] }
 0x275   :  { %2544 = vrcp.f32 %v1178_v32 }
 0x276   :  { %2546 = vrcp.f32 %v1180_v22 }
 0x27e   :  { %v2543_v23 = vpop.eup %2542 }
 0x27f   :  { %v2545_v35 = vpop.eup %2544  ;;  %v1188_v28 = vmul.f32 %v2543_v23, %v3111_v31  ;;  %v3664_v31 = vld [vmem:[#allocation45_spill] sm:$0xff] }
 0x280   :  { %v2547_v32 = vpop.eup %2546 }
 0x281   :  { %v1158_v33 = vpop.f32.mrb[32].mxu0 }
 0x282   :  { %v1168_v49 = vadd.f32 %v1158_v33, %v3657_v51  ;;  %v2279_v58 = vpop.f32.mrb[33].mxu0  ;;  %v3666_v33 = vld [vmem:[#allocation38_spill] sm:$0xff] }
 0x283   :  { %v1161_v26 = vpop.f32.mrb[34].mxu0  ;;  %v422_v51 = vadd.f32 %v3667_v30, %v3666_v33  ;;  %v3669_v58 = vld [vmem:[#allocation24_spill] sm:$0xff] }
 0x284   :  { %v1187_v40 = vmax.f32 %v1167_v3, %v1168_v49  ;;  %v2280_v34 = vpop.f32.mrb[35].mxu0  ;;  %v1035_v3 = vsel %vm1034_vm4, %v3114_v27, 0.0  ;;  %v3665_v27 = vld [vmem:[#allocation22_spill] sm:$0xff] }
 0x285   :  { %v491_v56 = vadd.f32 %v3665_v27, %v3664_v31  ;;  %v3668_v49 = vld [vmem:[#allocation46_spill] sm:$0xff] }
 0x286   :  { %v1189_v54 = vmul.f32 %v2545_v35, %v1187_v40  ;;  %v493_v23 = vadd.f32 %v3669_v58, %v3668_v49 }
 0x288   :  { %v3182_v25 = vadd.f32 %v1189_v54, %v1188_v28 }
 0x28a   :  { %2548 = vtanh.f32 %v3182_v25 }
 0x294   :  { %v2549_v2 = vpop.eup %2548 }
 0x295   :  { %v1192_v42 = vmul.f32 %v2549_v2, %v2547_v32 }
 0x297   :  { %v3186_v29 = vsel %vm1198_vm5, %v1192_v42, %v1035_v3  ;;  %v1205_v62 = vpack.c.bf16 %v1192_v42, %v1192_v42 }
 0x299   :  { %1239 = vmatmul.mubr.bf16.vlgmr.msra.gmra.mrb[28].mxu1 %v1205_v62  ;;  %1280 = vmatmul.mubr.bf16.vlgmr.msra.gmra.mrb[36].mxu0 %v1205_v62 }
 0x29a   :  { %2282 = vmatpush3.bf16.msra.mxu1 %v2916_v1  ;;  %2297 = vmatprep.mubr.msk.bf16.mxu1 %vm2764_vm1, %v3647_v0 }
 0x29b   :  { %2283 = vmatprep.subr.bf16.mxu1 %v3647_v0  ;;  %1371 = vmatpush1.bf16.msra.mxu0 %v2846_v36  ;;  %v3658_v36 = vld [vmem:[#allocation15_spill] sm:$0xff] }
 0x29c   :  { %1372 = vmatprep.subr.bf16.mxu0 %v2849_v38  ;;  %1402 = vmatprep.mubr.bf16.mxu0 %v3648_v37  ;;  %v3659_v38 = vld [vmem:[#allocation16_spill] sm:$0xff] }
 0x29e   :  { %2284 = vmatpush3.bf16.msra.mxu1 %v2929_v6 }
 0x29f   :  { %2285 = vmatprep.subr.bf16.mxu1 %v3647_v0  ;;  %1373 = vmatpush1.bf16.msra.mxu0 %v2853_v39  ;;  %v3660_v39 = vld [vmem:[#allocation13_spill] sm:$0xff] }
 0x2a0   :  { %1374 = vmatprep.subr.bf16.mxu0 %v2857_v41  ;;  %v3661_v41 = vld [vmem:[#allocation14_spill] sm:$0xff] }
 0x2a1   :  { %vm1521_vm6 = vcmp.eq.s32.totalorder %v3661_v41, 3  ;;  %vm1685_vm8 = vcmp.eq.s32.totalorder %v3661_v41, 4 }
 0x2a2   :  { %2286 = vmatpush3.bf16.msra.mxu1 %v2941_v9 }
 0x2a3   :  { %2287 = vmatprep.subr.bf16.mxu1 %v3647_v0  ;;  %1375 = vmatpush1.bf16.msra.mxu0 %v2863_v43  ;;  %v1522_v43 = vsel %vm1521_vm6, 1, %v3648_v37 }
 0x2a4   :  { %1376 = vmatprep.subr.bf16.mxu0 %v2867_v45  ;;  %1524 = vperm.xlu1 %2405, %v1522_v43   ;;  %v3662_v45 = vld [vmem:[#allocation37_spill] sm:$0xff] }
 0x2a6   :  { %2288 = vmatpush3.bf16.msra.mxu1 %v2951_v12 }
 0x2a7   :  { %2289 = vmatprep.subr.bf16.mxu1 %v3647_v0  ;;  %1377 = vmatpush1.bf16.msra.mxu0 %v2872_v46  ;;  %v3663_v46 = vld [vmem:[#allocation21_spill] sm:$0xff] }
 0x2a8   :  { %1378 = vmatprep.subr.bf16.mxu0 %v2875_v48  ;;  %v420_v48 = vadd.f32 %v3663_v46, %v3662_v45 }
 0x2aa   :  { %2290 = vmatpush3.bf16.msra.mxu1 %v2962_v15 }
 0x2ab   :  { %2291 = vmatprep.subr.bf16.mxu1 %v3647_v0  ;;  %1379 = vmatpush1.bf16.msra.mxu0 %v2880_v50 }
 0x2ac   :  { %1380 = vmatprep.subr.bf16.mxu0 %v2883_v52 }
 0x2ae   :  { %2292 = vmatpush3.bf16.msra.mxu1 %v2972_v18 }
 0x2af   :  { %2293 = vmatprep.subr.bf16.mxu1 %v3647_v0  ;;  %1381 = vmatpush1.bf16.msra.mxu0 %v2885_v53 }
 0x2b0   :  { %1382 = vmatprep.subr.bf16.mxu0 %v2889_v55 }
 0x2b2   :  { %2294 = vmatpush3.bf16.msra.mxu1 %v2982_v21 }
 0x2b3   :  { %2295 = vmatprep.subr.bf16.mxu1 %v3647_v0  ;;  %1383 = vmatpush1.bf16.msra.mxu0 %v2894_v57 }
 0x2b4   :  { %1384 = vmatprep.subr.bf16.mxu0 %v2897_v59 }
 0x2b6   :  { %2296 = vmatpush3.bf16.msra.mxu1 %v2992_v24 }
 0x2b7   :  { %1411 = vmatprep.subr.bf16.mxu1 %v2903_v61  ;;  %1385 = vmatpush1.bf16.msra.mxu0 %v2900_v60 }
 0x2b8   :  { %2301 = vmatprep.subr.bf16.mxu0 %v3647_v0 }
 0x2b9   :  { %2298 = vmatmul.mubr.bf16.vlgmr.msra.gmra.mrb[32].mxu1 %v1205_v62 }
 0x2ba   :  { %1412 = vmatpush1.bf16.msra.mxu1 %v2914_v63  ;;  %1443 = vmatprep.mubr.bf16.mxu1 %v3648_v37 }
 0x2bb   :  { %1413 = vmatprep.subr.bf16.mxu1 %v2921_v4 }
 0x2be   :  { %1414 = vmatpush1.bf16.msra.mxu1 %v2927_v5 }
 0x2bf   :  { %1415 = vmatprep.subr.bf16.mxu1 %v2933_v7 }
 0x2c2   :  { %1416 = vmatpush1.bf16.msra.mxu1 %v2939_v8 }
 0x2c3   :  { %1417 = vmatprep.subr.bf16.mxu1 %v2945_v10 }
 0x2c6   :  { %1418 = vmatpush1.bf16.msra.mxu1 %v2949_v11 }
 0x2c7   :  { %1419 = vmatprep.subr.bf16.mxu1 %v2955_v13 }
 0x2ca   :  { %1420 = vmatpush1.bf16.msra.mxu1 %v2960_v14 }
 0x2cb   :  { %1421 = vmatprep.subr.bf16.mxu1 %v2966_v16 }
 0x2ce   :  { %1422 = vmatpush1.bf16.msra.mxu1 %v2970_v17 }
 0x2cf   :  { %1423 = vmatprep.subr.bf16.mxu1 %v2976_v19 }
 0x2d2   :  { %1424 = vmatpush1.bf16.msra.mxu1 %v2980_v20 }
 0x2d3   :  { %1425 = vmatprep.subr.bf16.mxu1 %v3658_v36 }
 0x2d6   :  { %1426 = vmatpush1.bf16.msra.mxu1 %v3659_v38 }
 0x2d7   :  { %1534 = vmatprep.subr.bf16.mxu1 %v3660_v39 }
 0x36c   :  { %v1240_v26 = vpop.f32.mrb[28].mxu1  ;;  %v1281_v40 = vpop.f32.mrb[36].mxu0 }
 0x36d   :  { %v1328_v34 = vadd.f32 %v1240_v26, %v420_v48  ;;  %v1330_v35 = vadd.f32 %v1281_v40, %v491_v56  ;;  %v1242_v22 = vpop.f32.mrb[29].mxu1  ;;  %v1283_v28 = vpop.f32.mrb[37].mxu0 }
 0x36e   :  { %v1329_v54 = vadd.f32 %v1242_v22, %v422_v51  ;;  %v1331_v47 = vadd.f32 %v1283_v28, %v493_v23  ;;  %v1244_v44 = vpop.f32.mrb[30].mxu1  ;;  %v1285_v32 = vpop.f32.mrb[38].mxu0  ;;  %v3670_v51 = vld [vmem:[#allocation39_spill] sm:$0xff] }
 0x36f   :  { %v1245_v2 = vpop.f32.mrb[31].mxu1  ;;  %v1286_v42 = vpop.f32.mrb[39].mxu0  ;;  %v2127_v62 = vmul.f32 -1.442695, %v1328_v34  ;;  %v2129_v46 = vmul.f32 -1.442695, %v1330_v35 }
 0x370   :  { %v2128_v3 = vmul.f32 -1.442695, %v1329_v54  ;;  %v1361_v2 = vpop.permute.xlu1 %1360 }
 0x371   :  { %vm1362_vm7 = vcmp.eq.s32.totalorder %v1361_v2, 1 }
 0x372   :  { %2550 = vpow2.f32 %v2128_v3 }
 0x373   :  { %2552 = vpow2.f32 %v2127_v62 }
 0x374   :  { %2554 = vpow2.f32 %v2129_v46  ;;  %v3279_v46 = vld [vmem:[#allocation8 + $0x50] ss:$20 sps:$4 sm:$0xff]  }
 0x37c   :  { %v2551_v39 = vpop.eup %2550 }
 0x37d   :  { %v2553_v43 = vpop.eup %2552  ;;  %v1343_v27 = vadd.f32 1.0, %v2551_v39 }
 0x37e   :  { %v1342_v30 = vadd.f32 1.0, %v2553_v43  ;;  %v2555_v56 = vpop.eup %2554  ;;  %v3265_v43 = vld [vmem:[#allocation8 + $0x2c] ss:$20 sps:$4 sm:$0xff]  }
 0x37f   :  { %2556 = vrcp.f32 %v1343_v27  ;;  %v1344_v54 = vadd.f32 1.0, %v2555_v56  ;;  %v3282_v27 = vld [vmem:[#allocation8 + $0x7c] ss:$20 sps:$4 sm:$0xff]  }
 0x380   :  { %2558 = vrcp.f32 %v1342_v30  ;;  %v3290_v30 = vld [vmem:[#allocation8 + $0xa4] ss:$20 sps:$4 sm:$0xff]  }
 0x381   :  { %2560 = vrcp.f32 %v1344_v54 }
 0x389   :  { %v2557_v26 = vpop.eup %2556 }
 0x38a   :  { %v2559_v34 = vpop.eup %2558  ;;  %v1352_v44 = vmul.f32 %v2557_v26, %v3182_v25  ;;  %v3262_v25 = vld [vmem:[#allocation8] ss:$20 sps:$4 sm:$0xff]  }
 0x38b   :  { %v2561_v42 = vpop.eup %2560  ;;  %v3675_v26 = vld [vmem:[#allocation40_spill] sm:$0xff] }
 0x38c   :  { %v1322_v48 = vpop.f32.mrb[32].mxu1 }
 0x38d   :  { %v1332_v58 = vadd.f32 %v1322_v48, %v3670_v51  ;;  %v2299_v23 = vpop.f32.mrb[33].mxu1 }
 0x38e   :  { %v1325_v40 = vpop.f32.mrb[34].mxu1 }
 0x38f   :  { %v1351_v22 = vmax.f32 %v1331_v47, %v1332_v58  ;;  %v2300_v28 = vpop.f32.mrb[35].mxu1 }
 0x391   :  { %v1353_v32 = vmul.f32 %v2559_v34, %v1351_v22 }
 0x393   :  { %v3252_v35 = vadd.f32 %v1353_v32, %v1352_v44 }
 0x395   :  { %2562 = vtanh.f32 %v3252_v35 }
 0x39f   :  { %v2563_v3 = vpop.eup %2562 }
 0x3a0   :  { %v1356_v62 = vmul.f32 %v2563_v3, %v2561_v42 }
 0x3a2   :  { %v3256_v39 = vsel %vm1362_vm7, %v1356_v62, %v3186_v29  ;;  %v1369_v47 = vpack.c.bf16 %v1356_v62, %v1356_v62  ;;  %v3274_v29 = vld [vmem:[#allocation8 + $0x54] ss:$20 sps:$4 sm:$0xff]  }
 0x3a4   :  { %1403 = vmatmul.mubr.bf16.vlgmr.msra.gmra.mrb[40].mxu0 %v1369_v47  ;;  %1444 = vmatmul.mubr.bf16.vlgmr.msra.gmra.mrb[36].mxu1 %v1369_v47 }
 0x3a5   :  { %2302 = vmatpush3.bf16.msra.mxu0 %v2916_v1  ;;  %2317 = vmatprep.mubr.msk.bf16.mxu0 %vm2764_vm1, %v3647_v0  ;;  %v3271_v1 = vld [vmem:[#allocation8 + $0x28] ss:$20 sps:$4 sm:$0xff]  }
 0x3a6   :  { %2303 = vmatprep.subr.bf16.mxu0 %v3647_v0  ;;  %1535 = vmatpush1.bf16.msra.mxu1 %v3262_v25 }
 0x3a7   :  { %1536 = vmatprep.subr.bf16.mxu1 %v3265_v43  ;;  %1566 = vmatprep.mubr.bf16.mxu1 %v3648_v37 }
 0x3a9   :  { %2304 = vmatpush3.bf16.msra.mxu0 %v2929_v6  ;;  %v3287_v6 = vld [vmem:[#allocation8 + $0x78] ss:$20 sps:$4 sm:$0xff]  }
 0x3aa   :  { %2305 = vmatprep.subr.bf16.mxu0 %v3647_v0  ;;  %1537 = vmatpush1.bf16.msra.mxu1 %v3271_v1 }
 0x3ab   :  { %1538 = vmatprep.subr.bf16.mxu1 %v3274_v29 }
 0x3ad   :  { %2306 = vmatpush3.bf16.msra.mxu0 %v2941_v9 }
 0x3ae   :  { %2307 = vmatprep.subr.bf16.mxu0 %v3647_v0  ;;  %1539 = vmatpush1.bf16.msra.mxu1 %v3279_v46 }
 0x3af   :  { %1540 = vmatprep.subr.bf16.mxu1 %v3282_v27 }
 0x3b1   :  { %2308 = vmatpush3.bf16.msra.mxu0 %v2951_v12 }
 0x3b2   :  { %2309 = vmatprep.subr.bf16.mxu0 %v3647_v0  ;;  %1541 = vmatpush1.bf16.msra.mxu1 %v3287_v6 }
 0x3b3   :  { %1542 = vmatprep.subr.bf16.mxu1 %v3290_v30 }
 0x3b5   :  { %2310 = vmatpush3.bf16.msra.mxu0 %v2962_v15 }
 0x3b6   :  { %2311 = vmatprep.subr.bf16.mxu0 %v3647_v0  ;;  %1543 = vmatpush1.bf16.msra.mxu1 %v2880_v50  ;;  %v3325_v50 = vld [vmem:[#allocation8 + $0x4] ss:$20 sps:$4 sm:$0xff]  }
 0x3b7   :  { %1544 = vmatprep.subr.bf16.mxu1 %v2883_v52  ;;  %v1686_v52 = vsel %vm1685_vm8, 1, %v3648_v37 }
 0x3b8   :  { %1688 = vperm.xlu0 %2404, %v1686_v52  }
 0x3b9   :  { %2312 = vmatpush3.bf16.msra.mxu0 %v2972_v18 }
 0x3ba   :  { %2313 = vmatprep.subr.bf16.mxu0 %v3647_v0  ;;  %1545 = vmatpush1.bf16.msra.mxu1 %v2885_v53  ;;  %v3671_v53 = vld [vmem:[#allocation25_spill] sm:$0xff] }
 0x3bb   :  { %1546 = vmatprep.subr.bf16.mxu1 %v2889_v55  ;;  %v424_v55 = vadd.f32 %v3671_v53, %v3662_v45 }
 0x3bd   :  { %2314 = vmatpush3.bf16.msra.mxu0 %v2982_v21 }
 0x3be   :  { %2315 = vmatprep.subr.bf16.mxu0 %v3647_v0  ;;  %1547 = vmatpush1.bf16.msra.mxu1 %v2894_v57  ;;  %v3672_v57 = vld [vmem:[#allocation26_spill] sm:$0xff] }
 0x3bf   :  { %1548 = vmatprep.subr.bf16.mxu1 %v2897_v59  ;;  %v495_v59 = vadd.f32 %v3672_v57, %v3664_v31 }
 0x3c1   :  { %2316 = vmatpush3.bf16.msra.mxu0 %v2992_v24 }
 0x3c2   :  { %1575 = vmatprep.subr.bf16.mxu0 %v2903_v61  ;;  %1549 = vmatpush1.bf16.msra.mxu1 %v2900_v60  ;;  %v3673_v60 = vld [vmem:[#allocation27_spill] sm:$0xff] }
 0x3c3   :  { %2321 = vmatprep.subr.bf16.mxu1 %v3647_v0  ;;  %v426_v61 = vadd.f32 %v3673_v60, %v3666_v33  ;;  %v3346_v60 = vld [vmem:[#allocation8 + $0x10] ss:$20 sps:$4 sm:$0xff]  }
 0x3c4   :  { %2318 = vmatmul.mubr.bf16.vlgmr.msra.gmra.mrb[44].mxu0 %v1369_v47  ;;  %v1525_v47 = vpop.permute.xlu1 %1524 }
 0x3c5   :  { %1576 = vmatpush1.bf16.msra.mxu0 %v2914_v63  ;;  %1607 = vmatprep.mubr.bf16.mxu0 %v3648_v37  ;;  %v3674_v63 = vld [vmem:[#allocation28_spill] sm:$0xff]  ;;  %vm1526_vm9 = vcmp.eq.s32.totalorder %v1525_v47, 1 }
 0x3c6   :  { %1577 = vmatprep.subr.bf16.mxu0 %v2921_v4  ;;  %v497_v4 = vadd.f32 %v3674_v63, %v3668_v49  ;;  %v3375_v63 = vld [vmem:[#allocation8 + $0xa0] ss:$20 sps:$4 sm:$0xff]  }
 0x3c9   :  { %1578 = vmatpush1.bf16.msra.mxu0 %v2927_v5 }
 0x3ca   :  { %1579 = vmatprep.subr.bf16.mxu0 %v2933_v7 }
 0x3cd   :  { %1580 = vmatpush1.bf16.msra.mxu0 %v2939_v8 }
 0x3ce   :  { %1581 = vmatprep.subr.bf16.mxu0 %v2945_v10 }
 0x3d1   :  { %1582 = vmatpush1.bf16.msra.mxu0 %v2949_v11 }
 0x3d2   :  { %1583 = vmatprep.subr.bf16.mxu0 %v2955_v13 }
 0x3d5   :  { %1584 = vmatpush1.bf16.msra.mxu0 %v2960_v14 }
 0x3d6   :  { %1585 = vmatprep.subr.bf16.mxu0 %v2966_v16 }
 0x3d9   :  { %1586 = vmatpush1.bf16.msra.mxu0 %v2970_v17 }
 0x3da   :  { %1587 = vmatprep.subr.bf16.mxu0 %v2976_v19 }
 0x3dd   :  { %1588 = vmatpush1.bf16.msra.mxu0 %v2980_v20 }
 0x3de   :  { %1589 = vmatprep.subr.bf16.mxu0 %v3658_v36 }
 0x3e1   :  { %1590 = vmatpush1.bf16.msra.mxu0 %v3659_v38 }
 0x3e2   :  { %1698 = vmatprep.subr.bf16.mxu0 %v3325_v50 }
 0x477   :  { %v1404_v5 = vpop.f32.mrb[40].mxu0  ;;  %v1445_v7 = vpop.f32.mrb[36].mxu1 }
 0x478   :  { %v1492_v8 = vadd.f32 %v1404_v5, %v424_v55  ;;  %v1494_v9 = vadd.f32 %v1445_v7, %v495_v59  ;;  %v1406_v10 = vpop.f32.mrb[41].mxu0  ;;  %v1447_v11 = vpop.f32.mrb[37].mxu1  ;;  %v3383_v5 = vld [vmem:[#allocation8 + $0xc8] ss:$20 sps:$4 sm:$0xff]  }
 0x479   :  { %v1493_v12 = vadd.f32 %v1406_v10, %v426_v61  ;;  %v1495_v13 = vadd.f32 %v1447_v11, %v497_v4  ;;  %v1408_v14 = vpop.f32.mrb[42].mxu0  ;;  %v1449_v16 = vpop.f32.mrb[38].mxu1  ;;  %v3367_v61 = vld [vmem:[#allocation8 + $0x88] ss:$20 sps:$4 sm:$0xff]   ;;  %v3378_v4 = vld [vmem:[#allocation8 + $0xcc] ss:$20 sps:$4 sm:$0xff]  }
 0x47a   :  { %v1409_v17 = vpop.f32.mrb[43].mxu0  ;;  %v1450_v19 = vpop.f32.mrb[39].mxu1  ;;  %v2130_v36 = vmul.f32 -1.442695, %v1492_v8  ;;  %v2132_v48 = vmul.f32 -1.442695, %v1494_v9 }
 0x47b   :  { %v2131_v20 = vmul.f32 -1.442695, %v1493_v12  ;;  %v3386_v7 = vld [vmem:[#allocation8 + $0xf4] ss:$20 sps:$4 sm:$0xff]   ;;  %v3394_v8 = vld [vmem:[#allocation8 + $0x11c] ss:$20 sps:$4 sm:$0xff]  }
 0x47c   :  { %v3398_v9 = vld [vmem:[#allocation8 + $0x118] ss:$20 sps:$4 sm:$0xff]   ;;  %v3406_v10 = vld [vmem:[#allocation8 + $0x34] ss:$20 sps:$4 sm:$0xff]   ;;  %v3412_v11 = vld [vmem:[#allocation8 + $0x5c] ss:$20 sps:$4 sm:$0xff]  }
 0x47d   :  { %2564 = vpow2.f32 %v2131_v20  ;;  %v3415_v12 = vld [vmem:[#allocation8 + $0x58] ss:$20 sps:$4 sm:$0xff]   ;;  %v3421_v14 = vld [vmem:[#allocation8 + $0x80] ss:$20 sps:$4 sm:$0xff]   ;;  %v3427_v17 = vld [vmem:[#allocation8 + $0xa8] ss:$20 sps:$4 sm:$0xff]  }
 0x47e   :  { %2566 = vpow2.f32 %v2130_v36  ;;  %v3424_v16 = vld [vmem:[#allocation8 + $0xac] ss:$20 sps:$4 sm:$0xff]   ;;  %v3430_v19 = vld [vmem:[#allocation8 + $0xd4] ss:$20 sps:$4 sm:$0xff]   ;;  %v3433_v20 = vld [vmem:[#allocation8 + $0xd0] ss:$20 sps:$4 sm:$0xff]  }
 0x47f   :  { %2568 = vpow2.f32 %v2132_v48  ;;  %v3436_v36 = vld [vmem:[#allocation8 + $0xfc] ss:$20 sps:$4 sm:$0xff]   ;;  %v3445_v48 = vld [vmem:[#allocation8 + $0x120] ss:$20 sps:$4 sm:$0xff]  }
 0x487   :  { %v2565_v38 = vpop.eup %2564 }
 0x488   :  { %v2567_v41 = vpop.eup %2566  ;;  %v1507_v56 = vadd.f32 1.0, %v2565_v38  ;;  %v3439_v38 = vld [vmem:[#allocation8 + $0xf8] ss:$20 sps:$4 sm:$0xff]  }
 0x489   :  { %v1506_v51 = vadd.f32 1.0, %v2567_v41  ;;  %v2569_v23 = vpop.eup %2568  ;;  %v3442_v41 = vld [vmem:[#allocation8 + $0x124] ss:$20 sps:$4 sm:$0xff]  }
 0x48a   :  { %2570 = vrcp.f32 %v1507_v56  ;;  %v1508_v2 = vadd.f32 1.0, %v2569_v23  ;;  %v3451_v56 = vld [vmem:[%s3588_s4] sm:$0xff]  ;;  %s2765_s4 = smov [#allocation9]  }
 0x48b   :  { %2572 = vrcp.f32 %v1506_v51  ;;  %vm1849_vm10 = vcmp.eq.s32.totalorder %v3451_v56, 5  ;;  %vm2013_vm12 = vcmp.eq.s32.totalorder %v3451_v56, 6  ;;  %s2027_s10 = sshll.u32 %s2765_s4, 4  ;;  %s2028_s10 = int_to_ptr.vmem [resolvable:$true] %s2027_s10 }
 0x48c   :  { %2574 = vrcp.f32 %v1508_v2  ;;  %v1850_v51 = vsel %vm1849_vm10, 1, %v3648_v37  ;;  %s2727_s11 = scalar_lea.vmem %s2028_s10, 128  ;;  %p2732_p11 = scmp.lt.s32.totalorder %s2028_s10, %s2028_s10 }
 0x48d   :  { %1852 = vperm.xlu1 %2405, %v1850_v51   ;;  %p2728_p10 = scmp.ne.s32.totalorder %s2028_s10, %s2727_s11  ;;  %p2733_p12 = scmp.lt.s32.totalorder %s2727_s11, %s2727_s11 }
 0x48f   :  { %p2734_p13 = por %p2733_p12, %p2732_p11 }
 0x491   :  { %p2735_p0 = pnand %p2734_p13, %p2728_p10 }
 0x494   :  { %v2571_v28 = vpop.eup %2570 }
 0x495   :  { %v2573_v32 = vpop.eup %2572  ;;  %v1516_v42 = vmul.f32 %v2571_v28, %v3252_v35  ;;  %v3355_v35 = vld [vmem:[#allocation8 + $0x38] ss:$20 sps:$4 sm:$0xff]  }
 0x496   :  { %v2575_v52 = vpop.eup %2574 }
 0x497   :  { %v1486_v58 = vpop.f32.mrb[44].mxu0 }
 0x498   :  { %v1496_v40 = vadd.f32 %v1486_v58, %v3675_v26  ;;  %v2319_v22 = vpop.f32.mrb[45].mxu0  ;;  %v3676_v58 = vld [vmem:[#allocation29_spill] sm:$0xff]  ;;  %v3677_v26 = vld [vmem:[#allocation30_spill] sm:$0xff] }
 0x499   :  { %v1489_v34 = vpop.f32.mrb[46].mxu0  ;;  %v430_v23 = vadd.f32 %v3676_v58, %v3662_v45  ;;  %v3678_v22 = vld [vmem:[#allocation31_spill] sm:$0xff] }
 0x49a   :  { %v1515_v54 = vmax.f32 %v1495_v13, %v1496_v40  ;;  %v2320_v44 = vpop.f32.mrb[47].mxu0  ;;  %v3418_v13 = vld [vmem:[#allocation8 + $0x84] ss:$20 sps:$4 sm:$0xff]   ;;  %v501_v40 = vadd.f32 %v3677_v26, %v3664_v31  ;;  %v432_v28 = vadd.f32 %v3678_v22, %v3666_v33 }
 0x49b   :  { %v3679_v34 = vld [vmem:[#allocation32_spill] sm:$0xff] }
 0x49c   :  { %v1517_v3 = vmul.f32 %v2573_v32, %v1515_v54  ;;  %v503_v54 = vadd.f32 %v3679_v34, %v3668_v49 }
 0x49e   :  { %v3340_v62 = vadd.f32 %v1517_v3, %v1516_v42 }
 0x4a0   :  { %2576 = vtanh.f32 %v3340_v62 }
 0x4aa   :  { %v2577_v53 = vpop.eup %2576 }
 0x4ab   :  { %v1520_v55 = vmul.f32 %v2577_v53, %v2575_v52 }
 0x4ad   :  { %v3344_v57 = vsel %vm1526_vm9, %v1520_v55, %v3256_v39  ;;  %v1533_v59 = vpack.c.bf16 %v1520_v55, %v1520_v55  ;;  %v3361_v39 = vld [vmem:[#allocation8 + $0x60] ss:$20 sps:$4 sm:$0xff]  }
 0x4af   :  { %1567 = vmatmul.mubr.bf16.vlgmr.msra.gmra.mrb[40].mxu1 %v1533_v59  ;;  %1608 = vmatmul.mubr.bf16.vlgmr.msra.gmra.mrb[48].mxu0 %v1533_v59 }
 0x4b0   :  { %2322 = vmatpush3.bf16.msra.mxu1 %v3346_v60  ;;  %2337 = vmatprep.mubr.msk.bf16.mxu1 %vm2764_vm1, %v3647_v0 }
 0x4b1   :  { %2323 = vmatprep.subr.bf16.mxu1 %v3647_v0  ;;  %1699 = vmatpush1.bf16.msra.mxu0 %v3262_v25 }
 0x4b2   :  { %1700 = vmatprep.subr.bf16.mxu0 %v3265_v43  ;;  %1730 = vmatprep.mubr.bf16.mxu0 %v3648_v37 }
 0x4b4   :  { %2324 = vmatpush3.bf16.msra.mxu1 %v3355_v35 }
 0x4b5   :  { %2325 = vmatprep.subr.bf16.mxu1 %v3647_v0  ;;  %1701 = vmatpush1.bf16.msra.mxu0 %v3271_v1 }
 0x4b6   :  { %1702 = vmatprep.subr.bf16.mxu0 %v3274_v29 }
 0x4b8   :  { %2326 = vmatpush3.bf16.msra.mxu1 %v3361_v39 }
 0x4b9   :  { %2327 = vmatprep.subr.bf16.mxu1 %v3647_v0  ;;  %1703 = vmatpush1.bf16.msra.mxu0 %v3279_v46 }
 0x4ba   :  { %1704 = vmatprep.subr.bf16.mxu0 %v3282_v27 }
 0x4bc   :  { %2328 = vmatpush3.bf16.msra.mxu1 %v3367_v61 }
 0x4bd   :  { %2329 = vmatprep.subr.bf16.mxu1 %v3647_v0  ;;  %1705 = vmatpush1.bf16.msra.mxu0 %v3287_v6 }
 0x4be   :  { %1706 = vmatprep.subr.bf16.mxu0 %v3290_v30 }
 0x4c0   :  { %2330 = vmatpush3.bf16.msra.mxu1 %v2962_v15  ;;  %v3391_v15 = vld [vmem:[#allocation8 + $0xf0] ss:$20 sps:$4 sm:$0xff]  }
 0x4c1   :  { %2331 = vmatprep.subr.bf16.mxu1 %v3647_v0  ;;  %1707 = vmatpush1.bf16.msra.mxu0 %v3375_v63 }
 0x4c2   :  { %1708 = vmatprep.subr.bf16.mxu0 %v3378_v4 }
 0x4c4   :  { %2332 = vmatpush3.bf16.msra.mxu1 %v2972_v18  ;;  %v2639_v18 = vld [vmem:[#allocation8 + $0xc] ss:$20 sps:$4 sm:$0xff]  }
 0x4c5   :  { %2333 = vmatprep.subr.bf16.mxu1 %v3647_v0  ;;  %1709 = vmatpush1.bf16.msra.mxu0 %v3383_v5 }
 0x4c6   :  { %1710 = vmatprep.subr.bf16.mxu0 %v3386_v7 }
 0x4c8   :  { %2334 = vmatpush3.bf16.msra.mxu1 %v2982_v21  ;;  %v3402_v21 = vld [vmem:[#allocation8 + $0x8] ss:$20 sps:$4 sm:$0xff]  }
 0x4c9   :  { %2335 = vmatprep.subr.bf16.mxu1 %v3647_v0  ;;  %1711 = vmatpush1.bf16.msra.mxu0 %v3391_v15 }
 0x4ca   :  { %1712 = vmatprep.subr.bf16.mxu0 %v3394_v8 }
 0x4cc   :  { %2336 = vmatpush3.bf16.msra.mxu1 %v2992_v24  ;;  %v3409_v24 = vld [vmem:[#allocation8 + $0x30] ss:$20 sps:$4 sm:$0xff]  }
 0x4cd   :  { %1739 = vmatprep.subr.bf16.mxu1 %v2639_v18  ;;  %1713 = vmatpush1.bf16.msra.mxu0 %v3398_v9 }
 0x4ce   :  { %2341 = vmatprep.subr.bf16.mxu0 %v3647_v0 }
 0x4cf   :  { %2338 = vmatmul.mubr.bf16.vlgmr.msra.gmra.mrb[44].mxu1 %v1533_v59 }
 0x4d0   :  { %1740 = vmatpush1.bf16.msra.mxu1 %v3402_v21  ;;  %1771 = vmatprep.mubr.bf16.mxu1 %v3648_v37 }
 0x4d1   :  { %1741 = vmatprep.subr.bf16.mxu1 %v3406_v10 }
 0x4d4   :  { %1742 = vmatpush1.bf16.msra.mxu1 %v3409_v24 }
 0x4d5   :  { %1743 = vmatprep.subr.bf16.mxu1 %v3412_v11 }
 0x4d8   :  { %1744 = vmatpush1.bf16.msra.mxu1 %v3415_v12 }
 0x4d9   :  { %1745 = vmatprep.subr.bf16.mxu1 %v3418_v13 }
 0x4dc   :  { %1746 = vmatpush1.bf16.msra.mxu1 %v3421_v14 }
 0x4dd   :  { %1747 = vmatprep.subr.bf16.mxu1 %v3424_v16 }
 0x4e0   :  { %1748 = vmatpush1.bf16.msra.mxu1 %v3427_v17 }
 0x4e1   :  { %1749 = vmatprep.subr.bf16.mxu1 %v3430_v19 }
 0x4e4   :  { %1750 = vmatpush1.bf16.msra.mxu1 %v3433_v20 }
 0x4e5   :  { %1751 = vmatprep.subr.bf16.mxu1 %v3436_v36 }
 0x4e8   :  { %1752 = vmatpush1.bf16.msra.mxu1 %v3439_v38 }
 0x4e9   :  { %1753 = vmatprep.subr.bf16.mxu1 %v3442_v41 }
 0x4ec   :  { %1754 = vmatpush1.bf16.msra.mxu1 %v3445_v48 }
 0x4ed   :  { %1903 = vmatprep.subr.bf16.mxu1 %v2639_v18 }
 0x582   :  { %v1568_v44 = vpop.f32.mrb[40].mxu1  ;;  %v1609_v32 = vpop.f32.mrb[48].mxu0 }
 0x583   :  { %v1656_v2 = vadd.f32 %v1568_v44, %v430_v23  ;;  %v1658_v42 = vadd.f32 %v1609_v32, %v501_v40  ;;  %v1570_v3 = vpop.f32.mrb[41].mxu1  ;;  %v1611_v47 = vpop.f32.mrb[49].mxu0 }
 0x584   :  { %v1657_v52 = vadd.f32 %v1570_v3, %v432_v28  ;;  %v1659_v53 = vadd.f32 %v1611_v47, %v503_v54  ;;  %v1572_v55 = vpop.f32.mrb[42].mxu1  ;;  %v1613_v59 = vpop.f32.mrb[50].mxu0  ;;  %v3680_v28 = vld [vmem:[#allocation43_spill] sm:$0xff] }
 0x585   :  { %v1573_v18 = vpop.f32.mrb[43].mxu1  ;;  %v1614_v51 = vpop.f32.mrb[51].mxu0  ;;  %v2133_v26 = vmul.f32 -1.442695, %v1656_v2  ;;  %v2135_v31 = vmul.f32 -1.442695, %v1658_v42 }
 0x586   :  { %v2134_v58 = vmul.f32 -1.442695, %v1657_v52 }
 0x588   :  { %2578 = vpow2.f32 %v2134_v58 }
 0x589   :  { %2580 = vpow2.f32 %v2133_v26 }
 0x58a   :  { %2582 = vpow2.f32 %v2135_v31  ;;  %v1689_v31 = vpop.permute.xlu0 %1688 }
 0x58b   :  { %vm1690_vm11 = vcmp.eq.s32.totalorder %v1689_v31, 1 }
 0x592   :  { %v2579_v22 = vpop.eup %2578 }
 0x593   :  { %v2581_v33 = vpop.eup %2580  ;;  %v1671_v34 = vadd.f32 1.0, %v2579_v22 }
 0x594   :  { %v1670_v49 = vadd.f32 1.0, %v2581_v33  ;;  %v2583_v40 = vpop.eup %2582 }
 0x595   :  { %2584 = vrcp.f32 %v1671_v34  ;;  %v1672_v55 = vadd.f32 1.0, %v2583_v40  ;;  %v3688_v34 = vld [vmem:[#allocation44_spill] sm:$0xff] }
 0x596   :  { %2586 = vrcp.f32 %v1670_v49 }
 0x597   :  { %2588 = vrcp.f32 %v1672_v55 }
 0x59f   :  { %v2585_v32 = vpop.eup %2584 }
 0x5a0   :  { %v2587_v2 = vpop.eup %2586  ;;  %v1680_v59 = vmul.f32 %v2585_v32, %v3340_v62  ;;  %v3490_v62 = vld [vmem:[#allocation8 + $0xb0] ss:$20 sps:$4 sm:$0xff]  }
 0x5a1   :  { %v2589_v33 = vpop.eup %2588 }
 0x5a2   :  { %v1650_v23 = vpop.f32.mrb[44].mxu1 }
 0x5a3   :  { %v1660_v54 = vadd.f32 %v1650_v23, %v3680_v28  ;;  %v2339_v44 = vpop.f32.mrb[45].mxu1 }
 0x5a4   :  { %v1653_v3 = vpop.f32.mrb[46].mxu1 }
 0x5a5   :  { %v1679_v47 = vmax.f32 %v1659_v53, %v1660_v54  ;;  %v2340_v52 = vpop.f32.mrb[47].mxu1 }
 0x5a7   :  { %v1681_v18 = vmul.f32 %v2587_v2, %v1679_v47 }
 0x5a9   :  { %v3465_v42 = vadd.f32 %v1681_v18, %v1680_v59  ;;  %v1853_v59 = vpop.permute.xlu1 %1852 }
 0x5aa   :  { %vm1854_vm13 = vcmp.eq.s32.totalorder %v1853_v59, 1 }
 0x5ab   :  { %2590 = vtanh.f32 %v3465_v42 }
 0x5b5   :  { %v2591_v49 = vpop.eup %2590 }
 0x5b6   :  { %v1684_v51 = vmul.f32 %v2591_v49, %v2589_v33 }
 0x5b8   :  { %v3469_v58 = vsel %vm1690_vm11, %v1684_v51, %v3344_v57  ;;  %v1697_v53 = vpack.c.bf16 %v1684_v51, %v1684_v51  ;;  %v3496_v57 = vld [vmem:[#allocation8 + $0xd8] ss:$20 sps:$4 sm:$0xff]  }
 0x5ba   :  { %1731 = vmatmul.mubr.bf16.vlgmr.msra.gmra.mrb[52].mxu0 %v1697_v53  ;;  %1772 = vmatmul.mubr.bf16.vlgmr.msra.gmra.mrb[48].mxu1 %v1697_v53 }
 0x5bb   :  { %2342 = vmatpush3.bf16.msra.mxu0 %v3346_v60  ;;  %2357 = vmatprep.mubr.msk.bf16.mxu0 %vm2764_vm1, %v3647_v0 }
 0x5bc   :  { %2343 = vmatprep.subr.bf16.mxu0 %v3647_v0  ;;  %1904 = vmatpush1.bf16.msra.mxu1 %v3402_v21  ;;  %v3502_v21 = vld [vmem:[#allocation8 + $0x100] ss:$20 sps:$4 sm:$0xff]  }
 0x5bd   :  { %1905 = vmatprep.subr.bf16.mxu1 %v3406_v10  ;;  %1935 = vmatprep.mubr.bf16.mxu1 %v3648_v37  ;;  %v3508_v10 = vld [vmem:[#allocation8 + $0x128] ss:$20 sps:$4 sm:$0xff]  }
 0x5bf   :  { %2344 = vmatpush3.bf16.msra.mxu0 %v3355_v35 }
 0x5c0   :  { %2345 = vmatprep.subr.bf16.mxu0 %v3647_v0  ;;  %1906 = vmatpush1.bf16.msra.mxu1 %v3409_v24 }
 0x5c1   :  { %1907 = vmatprep.subr.bf16.mxu1 %v3412_v11 }
 0x5c3   :  { %2346 = vmatpush3.bf16.msra.mxu0 %v3361_v39 }
 0x5c4   :  { %2347 = vmatprep.subr.bf16.mxu0 %v3647_v0  ;;  %1908 = vmatpush1.bf16.msra.mxu1 %v3415_v12 }
 0x5c5   :  { %1909 = vmatprep.subr.bf16.mxu1 %v3418_v13 }
 0x5c7   :  { %2348 = vmatpush3.bf16.msra.mxu0 %v3367_v61 }
 0x5c8   :  { %2349 = vmatprep.subr.bf16.mxu0 %v3647_v0  ;;  %1910 = vmatpush1.bf16.msra.mxu1 %v3421_v14 }
 0x5c9   :  { %1911 = vmatprep.subr.bf16.mxu1 %v3424_v16 }
 0x5cb   :  { %2350 = vmatpush3.bf16.msra.mxu0 %v3490_v62 }
 0x5cc   :  { %2351 = vmatprep.subr.bf16.mxu0 %v3647_v0  ;;  %1912 = vmatpush1.bf16.msra.mxu1 %v3427_v17 }
 0x5cd   :  { %1913 = vmatprep.subr.bf16.mxu1 %v3430_v19 }
 0x5cf   :  { %2352 = vmatpush3.bf16.msra.mxu0 %v3496_v57 }
 0x5d0   :  { %2353 = vmatprep.subr.bf16.mxu0 %v3647_v0  ;;  %1914 = vmatpush1.bf16.msra.mxu1 %v3433_v20 }
 0x5d1   :  { %1915 = vmatprep.subr.bf16.mxu1 %v3436_v36 }
 0x5d3   :  { %2354 = vmatpush3.bf16.msra.mxu0 %v3502_v21 }
 0x5d4   :  { %2355 = vmatprep.subr.bf16.mxu0 %v3647_v0  ;;  %1916 = vmatpush1.bf16.msra.mxu1 %v3439_v38 }
 0x5d5   :  { %1917 = vmatprep.subr.bf16.mxu1 %v3442_v41 }
 0x5d7   :  { %2356 = vmatpush3.bf16.msra.mxu0 %v3508_v10 }
 0x5d8   :  { %1862 = vmatprep.subr.bf16.mxu0 %v3325_v50  ;;  %1918 = vmatpush1.bf16.msra.mxu1 %v3445_v48 }
 0x5d9   :  { %2361 = vmatprep.subr.bf16.mxu1 %v3647_v0 }
 0x5da   :  { %2358 = vmatmul.mubr.bf16.vlgmr.msra.gmra.mrb[56].mxu0 %v1697_v53 }
 0x5db   :  { %1863 = vmatpush1.bf16.msra.mxu0 %v3262_v25  ;;  %1894 = vmatprep.mubr.bf16.mxu0 %v3648_v37  ;;  %v2014_v25 = vsel %vm2013_vm12, 1, %v3648_v37 }
 0x5dc   :  { %1864 = vmatprep.subr.bf16.mxu0 %v3265_v43  ;;  %2016 = vperm.xlu0 %2404, %v2014_v25   ;;  %v3681_v43 = vld [vmem:[#allocation33_spill] sm:$0xff] }
 0x5df   :  { %1865 = vmatpush1.bf16.msra.mxu0 %v3271_v1  ;;  %v434_v1 = vadd.f32 %v3681_v43, %v3662_v45 }
 0x5e0   :  { %1866 = vmatprep.subr.bf16.mxu0 %v3274_v29  ;;  %v3682_v29 = vld [vmem:[#allocation45_spill] sm:$0xff] }
 0x5e3   :  { %1867 = vmatpush1.bf16.msra.mxu0 %v3279_v46  ;;  %v3683_v46 = vld [vmem:[#allocation34_spill] sm:$0xff] }
 0x5e4   :  { %1868 = vmatprep.subr.bf16.mxu0 %v3282_v27  ;;  %v505_v27 = vadd.f32 %v3683_v46, %v3682_v29 }
 0x5e7   :  { %1869 = vmatpush1.bf16.msra.mxu0 %v3287_v6  ;;  %v3684_v6 = vld [vmem:[#allocation38_spill] sm:$0xff] }
 0x5e8   :  { %1870 = vmatprep.subr.bf16.mxu0 %v3290_v30  ;;  %v3685_v30 = vld [vmem:[#allocation35_spill] sm:$0xff] }
 0x5e9   :  { %v436_v50 = vadd.f32 %v3685_v30, %v3684_v6 }
 0x5eb   :  { %1871 = vmatpush1.bf16.msra.mxu0 %v3375_v63  ;;  %v3686_v63 = vld [vmem:[#allocation46_spill] sm:$0xff] }
 0x5ec   :  { %1872 = vmatprep.subr.bf16.mxu0 %v3378_v4  ;;  %v3687_v4 = vld [vmem:[#allocation36_spill] sm:$0xff] }
 0x5ef   :  { %1873 = vmatpush1.bf16.msra.mxu0 %v3383_v5  ;;  %v507_v5 = vadd.f32 %v3687_v4, %v3686_v63  ;;  %v3689_v4 = vld [vmem:[#allocation42_spill] sm:$0xff] }
 0x5f0   :  { %1874 = vmatprep.subr.bf16.mxu0 %v3386_v7 }
 0x5f3   :  { %1875 = vmatpush1.bf16.msra.mxu0 %v3391_v15 }
 0x5f4   :  { %1876 = vmatprep.subr.bf16.mxu0 %v3394_v8 }
 0x5f7   :  { %1877 = vmatpush1.bf16.msra.mxu0 %v3398_v9 }
 0x68d   :  { %v1732_v7 = vpop.f32.mrb[52].mxu0  ;;  %v1773_v15 = vpop.f32.mrb[48].mxu1 }
 0x68e   :  { %v1820_v8 = vadd.f32 %v1732_v7, %v434_v1  ;;  %v1822_v9 = vadd.f32 %v1773_v15, %v505_v27  ;;  %v1734_v24 = vpop.f32.mrb[53].mxu0  ;;  %v1775_v11 = vpop.f32.mrb[49].mxu1 }
 0x68f   :  { %v1821_v37 = vadd.f32 %v1734_v24, %v436_v50  ;;  %v1823_v12 = vadd.f32 %v1775_v11, %v507_v5  ;;  %v1736_v13 = vpop.f32.mrb[54].mxu0  ;;  %v1777_v14 = vpop.f32.mrb[50].mxu1 }
 0x690   :  { %v1737_v16 = vpop.f32.mrb[55].mxu0  ;;  %v1778_v17 = vpop.f32.mrb[51].mxu1  ;;  %v2136_v20 = vmul.f32 -1.442695, %v1820_v8  ;;  %v2138_v41 = vmul.f32 -1.442695, %v1822_v9 }
 0x691   :  { %v2137_v19 = vmul.f32 -1.442695, %v1821_v37  ;;  %v2017_v16 = vpop.permute.xlu0 %2016 }
 0x692   :  { %vm2018_vm14 = vcmp.eq.s32.totalorder %v2017_v16, 1 }
 0x693   :  { %2592 = vpow2.f32 %v2137_v19 }
 0x694   :  { %2594 = vpow2.f32 %v2136_v20 }
 0x695   :  { %2596 = vpow2.f32 %v2138_v41 }
 0x69d   :  { %v2593_v36 = vpop.eup %2592 }
 0x69e   :  { %v2595_v38 = vpop.eup %2594  ;;  %v1835_v48 = vadd.f32 1.0, %v2593_v36 }
 0x69f   :  { %v1834_v56 = vadd.f32 1.0, %v2595_v38  ;;  %v2597_v22 = vpop.eup %2596 }
 0x6a0   :  { %2598 = vrcp.f32 %v1835_v48  ;;  %v1836_v47 = vadd.f32 1.0, %v2597_v22 }
 0x6a1   :  { %2600 = vrcp.f32 %v1834_v56 }
 0x6a2   :  { %2602 = vrcp.f32 %v1836_v47 }
 0x6aa   :  { %v2599_v28 = vpop.eup %2598 }
 0x6ab   :  { %v2601_v3 = vpop.eup %2600  ;;  %v1844_v52 = vmul.f32 %v2599_v28, %v3465_v42 }
 0x6ac   :  { %v2603_v18 = vpop.eup %2602 }
 0x6ad   :  { %v1814_v26 = vpop.f32.mrb[56].mxu0 }
 0x6ae   :  { %v1824_v23 = vadd.f32 %v1814_v26, %v3688_v34  ;;  %v2359_v40 = vpop.f32.mrb[57].mxu0 }
 0x6af   :  { %v1817_v54 = vpop.f32.mrb[58].mxu0 }
 0x6b0   :  { %v1843_v44 = vmax.f32 %v1823_v12, %v1824_v23  ;;  %v2360_v32 = vpop.f32.mrb[59].mxu0 }
 0x6b2   :  { %v1845_v2 = vmul.f32 %v2601_v3, %v1843_v44 }
 0x6b4   :  { %v3542_v55 = vadd.f32 %v1845_v2, %v1844_v52 }
 0x6b6   :  { %2604 = vtanh.f32 %v3542_v55 }
 0x6c0   :  { %v2605_v31 = vpop.eup %2604 }
 0x6c1   :  { %v1848_v33 = vmul.f32 %v2605_v31, %v2603_v18 }
 0x6c3   :  { %v3546_v49 = vsel %vm1854_vm13, %v1848_v33, %v3469_v58  ;;  %v1861_v51 = vpack.c.bf16 %v1848_v33, %v1848_v33 }
 0x6c5   :  { %1895 = vmatmul.mubr.bf16.vlgmr.msra.gmra.mrb[12].mxu0 %v1861_v51  ;;  %1936 = vmatmul.mubr.bf16.vlgmr.msra.gmra.mrb[12].mxu1 %v1861_v51 }
 0x6c6   :  { %2362 = vmatpush3.bf16.msra.mxu1 %v3346_v60  ;;  %2377 = vmatprep.mubr.msk.bf16.mxu1 %vm2764_vm1, %v3647_v0 }
 0x6c7   :  { %2363 = vmatprep.subr.bf16.mxu1 %v3647_v0 }
 0x6ca   :  { %2364 = vmatpush3.bf16.msra.mxu1 %v3355_v35 }
 0x6cb   :  { %2365 = vmatprep.subr.bf16.mxu1 %v3647_v0 }
 0x6ce   :  { %2366 = vmatpush3.bf16.msra.mxu1 %v3361_v39 }
 0x6cf   :  { %2367 = vmatprep.subr.bf16.mxu1 %v3647_v0 }
 0x6d2   :  { %2368 = vmatpush3.bf16.msra.mxu1 %v3367_v61 }
 0x6d3   :  { %2369 = vmatprep.subr.bf16.mxu1 %v3647_v0 }
 0x6d6   :  { %2370 = vmatpush3.bf16.msra.mxu1 %v3490_v62 }
 0x6d7   :  { %2371 = vmatprep.subr.bf16.mxu1 %v3647_v0 }
 0x6da   :  { %2372 = vmatpush3.bf16.msra.mxu1 %v3496_v57 }
 0x6db   :  { %2373 = vmatprep.subr.bf16.mxu1 %v3647_v0 }
 0x6de   :  { %2374 = vmatpush3.bf16.msra.mxu1 %v3502_v21 }
 0x6df   :  { %2375 = vmatprep.subr.bf16.mxu1 %v3647_v0 }
 0x6e2   :  { %2376 = vmatpush3.bf16.msra.mxu1 %v3508_v10 }
 0x6e5   :  { %2378 = vmatmul.mubr.bf16.vlgmr.msra.gmra.mrb[52].mxu1 %v1861_v51 }
 0x798   :  { %v1896_v60 = vpop.f32.mrb[12].mxu0  ;;  %v1937_v35 = vpop.f32.mrb[12].mxu1 }
 0x799   :  { %v2381_v39 = vadd.f32 %v1896_v60, %v3662_v45  ;;  %v1898_v61 = vpop.f32.mrb[13].mxu0  ;;  %v1939_v42 = vpop.f32.mrb[13].mxu1  ;;  %v2383_v0 = vadd.f32 %v1937_v35, %v3682_v29 }
 0x79a   :  { %v2382_v58 = vadd.f32 %v1898_v61, %v3684_v6  ;;  %v1900_v53 = vpop.f32.mrb[14].mxu0  ;;  %v1941_v62 = vpop.f32.mrb[14].mxu1  ;;  %v2384_v50 = vadd.f32 %v1939_v42, %v3686_v63 }
 0x79b   :  { %v1901_v57 = vpop.f32.mrb[15].mxu0  ;;  %v1942_v25 = vpop.f32.mrb[15].mxu1  ;;  %v2139_v1 = vmul.f32 -1.442695, %v2381_v39  ;;  %v2141_v46 = vmul.f32 -1.442695, %v2383_v0 }
 0x79c   :  { %v2140_v43 = vmul.f32 -1.442695, %v2382_v58 }
 0x79e   :  { %2606 = vpow2.f32 %v2140_v43 }
 0x79f   :  { %2608 = vpow2.f32 %v2139_v1 }
 0x7a0   :  { %2610 = vpow2.f32 %v2141_v46 }
 0x7a8   :  { %v2607_v21 = vpop.eup %2606 }
 0x7a9   :  { %v2609_v10 = vpop.eup %2608  ;;  %v1999_v27 = vadd.f32 1.0, %v2607_v21 }
 0x7aa   :  { %v1998_v30 = vadd.f32 1.0, %v2609_v10  ;;  %v2611_v6 = vpop.eup %2610 }
 0x7ab   :  { %2612 = vrcp.f32 %v1999_v27  ;;  %v2000_v11 = vadd.f32 1.0, %v2611_v6 }
 0x7ac   :  { %2614 = vrcp.f32 %v1998_v30 }
 0x7ad   :  { %2616 = vrcp.f32 %v2000_v11 }
 0x7b5   :  { %v2613_v15 = vpop.eup %2612 }
 0x7b6   :  { %v2615_v29 = vpop.eup %2614  ;;  %v2008_v37 = vmul.f32 %v2613_v15, %v3542_v55 }
 0x7b7   :  { %v2617_v14 = vpop.eup %2616 }
 0x7b8   :  { %v1978_v45 = vpop.f32.mrb[52].mxu1 }
 0x7b9   :  { %v1988_v5 = vadd.f32 %v1978_v45, %v3689_v4  ;;  %v2379_v7 = vpop.f32.mrb[53].mxu1 }
 0x7ba   :  { %v1981_v8 = vpop.f32.mrb[54].mxu1 }
 0x7bb   :  { %v2007_v9 = vmax.f32 %v2384_v50, %v1988_v5  ;;  %v2380_v24 = vpop.f32.mrb[55].mxu1 }
 0x7bd   :  { %v2009_v12 = vmul.f32 %v2615_v29, %v2007_v9 }
 0x7bf   :  { %v2010_v13 = vadd.f32 %v2009_v12, %v2008_v37 }
 0x7c1   :  { %2618 = vtanh.f32 %v2010_v13 }
 0x7cb   :  { %v2619_v63 = vpop.eup %2618 }
 0x7cc   :  { %v2012_v17 = vmul.f32 %v2619_v63, %v2617_v14 }
 0x7ce   :  { %v2019_v19 = vsel %vm2018_vm14, %v2012_v17, %v3546_v49 }
 0x7cf   :  { %2020 = vst [vmem:[#allocation9] sm:$0xff] %v2019_v19 }
 0x7d0   :  { %2738 = shalt.err (!%p2735_p0)
}
 0x7d1   :  { %s2739_s14 = scalar_lea.hbm %s3589_s5, 128 }
 0x7d2   :  { %p2740_p1 = scmp.ne.s32.totalorder %s3589_s5, %s2739_s14  ;;  %p2743_p2 = scmp.lt.u32.totalorder %s2739_s14, %s3589_s5 }
 0x7d4   :  { %p2745_p3 = pnand %p2743_p2, %p2740_p1 }
 0x7d6   :  { %2748 = shalt.err (!%p2745_p3)
}
 0x7d7   :  { %2030 = dma.vmem_to_hbm [thread:$0]  %s2028_s10, 128, %s3589_s5, [#allocation5]  }
 0x7d8   :  { %2753 = dma.done.wait [#allocation5], 128  }
 0x7d9   :  { %2754 = vsyncadd [#allocation5], 4294967168 }
 0x7da   :  { %2034 = vsyncpa [#allocation4], 1 }
 0x7db   :  { %2035 = vsyncpa [#allocation7], 1 }
 0x7dc   :  { %2036 = vsyncpa [#allocation5], 1 }

</bundles_post_ra>
